<compile_context>
chip_gen: v5e
topology: v5e:2x2
jax: 0.10.0
libtpu: 0.0.40
codegen_flags: <defaults>
</compile_context>

<pallas_src>
import functools

import jax
import jax.numpy as jnp
from jax.experimental import pallas as pl
from jax.experimental.pallas import tpu as pltpu

_LANE = 128


def _round_up(x, m):
    return ((x + m - 1) // m) * m


def _pick_tile(n_pad, cap):
    """Largest multiple of 128 that is <= cap and divides n_pad."""
    t = max(_LANE, min(cap, n_pad))
    t = (t // _LANE) * _LANE
    while n_pad % t != 0:
        t -= _LANE
    return t


# ------------------------------ Pallas kernels ------------------------------

def _sage_layer_kernel(a_ref, deg_ref, xs_ref, xk_ref, wl_ref, wr_ref, b_ref,
                       o_ref, acc_ref):
    """One SAGEConv(mean) layer + ReLU.

    Grid = (row_tiles, k_tiles); axis 1 reduces over source-node tiles.
        acc += A_counts[i, k] @ X[k]          (int8 -> bf16, MXU, f32 accumulate)
        at last k:
          agg = acc * 1/max(deg, 1)           (EUP approx reciprocal)
          out = relu(agg @ W_l + x_i @ W_r + b_l)
    Matches PyG SAGEConv(aggr='mean'): lin_l(mean_j x_j) + lin_r(x_i), bias on lin_l.
    """
    k = pl.program_id(1)

    @pl.when(k == 0)
    def _init():
        acc_ref[...] = jnp.zeros_like(acc_ref)

    acc_ref[...] += jnp.dot(a_ref[...].astype(jnp.bfloat16), xk_ref[...],
                            preferred_element_type=jnp.float32)

    @pl.when(k == pl.num_programs(1) - 1)
    def _finalize():
        inv_deg = pl.reciprocal(jnp.maximum(deg_ref[...], 1.0), approx=True)
        agg = (acc_ref[...] * inv_deg).astype(jnp.bfloat16)        # (tm, F) bf16
        h = jnp.dot(agg, wl_ref[...], preferred_element_type=jnp.float32)
        h = h + jnp.dot(xs_ref[...], wr_ref[...],
                        preferred_element_type=jnp.float32)
        h = jnp.maximum(h + b_ref[...], 0.0)
        o_ref[...] = h.astype(o_ref.dtype)
        # TODO(synk): training-mode dropout would use pltpu.prng_seed /
        # pltpu.prng_random_bits; eval mode => identity.


def _make_final_kernel(n_extra):
    """Last SAGEConv layer fused with JK('cat') + Linear(final_dim, 1) + sigmoid.

    `n_extra` = number of earlier layer outputs (besides this layer's own input
    x_self, itself a JK term) feeding the head.
    """
    def kernel(*args):
        a_ref, deg_ref, xs_ref, xk_ref, wl_ref, wr_ref, bl_ref = args[:7]
        extra_refs = args[7:7 + n_extra]
        head_w_refs = args[7 + n_extra:9 + 2 * n_extra]   # n_extra + 2 splits
        bh_ref = args[9 + 2 * n_extra]
        o_ref = args[10 + 2 * n_extra]
        acc_ref = args[11 + 2 * n_extra]
        wh_extra = head_w_refs[:n_extra]
        wh_self = head_w_refs[n_extra]
        wh_last = head_w_refs[n_extra + 1]

        k = pl.program_id(1)

        @pl.when(k == 0)
        def _init():
            acc_ref[...] = jnp.zeros_like(acc_ref)

        acc_ref[...] += jnp.dot(a_ref[...].astype(jnp.bfloat16), xk_ref[...],
                                preferred_element_type=jnp.float32)

        @pl.when(k == pl.num_programs(1) - 1)
        def _finalize():
            inv_deg = pl.reciprocal(jnp.maximum(deg_ref[...], 1.0), approx=True)
            agg = (acc_ref[...] * inv_deg).astype(jnp.bfloat16)
            x_self = xs_ref[...]                                   # = h_{L-1}
            h_last = jnp.dot(agg, wl_ref[...],
                             preferred_element_type=jnp.float32)
            h_last = h_last + jnp.dot(x_self, wr_ref[...],
                                      preferred_element_type=jnp.float32)
            h_last = jnp.maximum(h_last + bl_ref[...], 0.0)

            # JumpingKnowledge('cat') + Linear head via per-layer weight splits:
            # the (N, H*L) concatenated intermediate is never materialized.
            logits = jnp.dot(h_last.astype(jnp.bfloat16), wh_last[...],
                             preferred_element_type=jnp.float32)
            logits = logits + jnp.dot(x_self, wh_self[...],
                                      preferred_element_type=jnp.float32)
            for h_ref, w_e in zip(extra_refs, wh_extra):
                logits = logits + jnp.dot(h_ref[...], w_e[...],
                                          preferred_element_type=jnp.float32)
            o_ref[...] = jax.nn.sigmoid(logits + bh_ref[...])
            # NOTE: (tile_m, 1) writeback is tiny; lane-dense repack only if it
            # ever shows in the profile.

    return kernel


# ------------------------------ pallas_call wrappers ------------------------

def _compiler_params():
    return pltpu.CompilerParams(
        dimension_semantics=("parallel", "arbitrary"),
        vmem_limit_bytes=32 * 1024 * 1024,
    )


def _sage_layer(a, deg, x, w_l, w_r, b, tile_m, tile_k):
    n_pad = a.shape[0]
    f_in = x.shape[1]
    f_out = w_l.shape[1]
    grid = (n_pad // tile_m, n_pad // tile_k)
    return pl.pallas_call(
        _sage_layer_kernel,
        out_shape=jax.ShapeDtypeStruct((n_pad, f_out), jnp.bfloat16),
        grid=grid,
        in_specs=[
            # NOTE: if DMA is still exposed after enlarging tiles, add
            # pipeline_mode=pl.Buffered(3) on this (dominant) stream.
            pl.BlockSpec((tile_m, tile_k), lambda i, k: (i, k)),     # A (int8)
            pl.BlockSpec((tile_m, 1), lambda i, k: (i, 0)),          # in-degree
            pl.BlockSpec((tile_m, f_in), lambda i, k: (i, 0)),       # x (self rows)
            pl.BlockSpec((tile_k, f_in), lambda i, k: (k, 0)),       # x (neighbor rows)
            pl.BlockSpec((f_in, f_out), lambda i, k: (0, 0)),        # W_l
            pl.BlockSpec((f_in, f_out), lambda i, k: (0, 0)),        # W_r
            pl.BlockSpec((1, f_out), lambda i, k: (0, 0)),           # b_l
        ],
        out_specs=pl.BlockSpec((tile_m, f_out), lambda i, k: (i, 0)),
        scratch_shapes=[pltpu.VMEM((tile_m, f_in), jnp.float32)],
        compiler_params=_compiler_params(),
    )(a, deg, x, x, w_l, w_r, b)


def _sage_final(a, deg, x, w_l, w_r, b, extra_hs, head_ws, head_b,
                tile_m, tile_k):
    n_pad = a.shape[0]
    f_in = x.shape[1]
    f_out = w_l.shape[1]
    n_extra = len(extra_hs)
    grid = (n_pad // tile_m, n_pad // tile_k)

    in_specs = [
        pl.BlockSpec((tile_m, tile_k), lambda i, k: (i, k)),
        pl.BlockSpec((tile_m, 1), lambda i, k: (i, 0)),
        pl.BlockSpec((tile_m, f_in), lambda i, k: (i, 0)),
        pl.BlockSpec((tile_k, f_in), lambda i, k: (k, 0)),
        pl.BlockSpec((f_in, f_out), lambda i, k: (0, 0)),
        pl.BlockSpec((f_in, f_out), lambda i, k: (0, 0)),
        pl.BlockSpec((1, f_out), lambda i, k: (0, 0)),
    ]
    for h in extra_hs:
        in_specs.append(pl.BlockSpec((tile_m, h.shape[1]), lambda i, k: (i, 0)))
    for w in head_ws:
        in_specs.append(pl.BlockSpec(w.shape, lambda i, k: (0, 0)))
    in_specs.append(pl.BlockSpec((1, 1), lambda i, k: (0, 0)))        # head bias

    return pl.pallas_call(
        _make_final_kernel(n_extra),
        out_shape=jax.ShapeDtypeStruct((n_pad, 1), jnp.float32),
        grid=grid,
        in_specs=in_specs,
        out_specs=pl.BlockSpec((tile_m, 1), lambda i, k: (i, 0)),
        scratch_shapes=[pltpu.VMEM((tile_m, f_in), jnp.float32)],
        compiler_params=_compiler_params(),
    )(a, deg, x, x, w_l, w_r, b, *extra_hs, *head_ws, head_b)


# ------------------------------ model glue ----------------------------------

def init_params(key, in_channels, hidden_channels=64, num_layers=2, jk="cat"):
    """Deterministic parameter init matching the torch module's shapes."""
    assert jk == "cat"
    params = {"convs": []}
    dims = [in_channels] + [hidden_channels] * num_layers
    for i in range(num_layers):
        key, k1, k2, k3 = jax.random.split(key, 4)
        f_in, f_out = dims[i], dims[i + 1]
        scale = 1.0 / jnp.sqrt(jnp.float32(f_in))
        params["convs"].append({
            "w_l": jax.random.uniform(k1, (f_in, f_out), jnp.float32, -scale, scale),
            "b_l": jax.random.uniform(k2, (1, f_out), jnp.float32, -scale, scale),
            "w_r": jax.random.uniform(k3, (f_in, f_out), jnp.float32, -scale, scale),
        })
    final_dim = hidden_channels * num_layers          # jk == 'cat'
    key, k1, k2 = jax.random.split(key, 3)
    scale = 1.0 / jnp.sqrt(jnp.float32(final_dim))
    params["lin_w"] = jax.random.uniform(k1, (final_dim, 1), jnp.float32, -scale, scale)
    params["lin_b"] = jax.random.uniform(k2, (1, 1), jnp.float32, -scale, scale)
    return params


def _pad2(arr, rows, cols, dtype):
    out = jnp.zeros((rows, cols), dtype)
    return out.at[:arr.shape[0], :arr.shape[1]].set(arr.astype(dtype))


def graphsage_forward(params, x, edge_index, *, tile_m_max=512, tile_k_max=1024):
    """Forward: per-layer SAGEConv(mean)+ReLU, JK 'cat', Linear head, sigmoid."""
    n, f_in = x.shape
    num_layers = len(params["convs"])
    hidden = params["convs"][0]["w_l"].shape[1]
    assert num_layers >= 2, "fused JK+head path assumes num_layers >= 2"

    # --- tile selection (decoupled row / reduction tiles) --------------------
    n128 = _round_up(n, _LANE)
    tile_k = min(_round_up(tile_k_max, _LANE), n128)
    n_pad = _round_up(n128, tile_k)
    tile_m = _pick_tile(n_pad, tile_m_max)
    # v7x megacore: keep >= 2 row tiles so the "parallel" axis splits across
    # both TensorCores (only possible when the graph has >= 2 lane-tiles).
    if n_pad // tile_m < 2 and n_pad // _LANE >= 2:
        tile_m = _pick_tile(n_pad, max(_LANE, (n_pad // 2 // _LANE) * _LANE))

    # Lane-dense feature layout: pad feature axes to 128 lanes (zero-padded
    # weights keep the math exact; padded columns stay exactly zero).
    f_pad = _round_up(f_in, _LANE)
    h_pad = _round_up(hidden, _LANE)

    # Dense edge-count matrix built DIRECTLY as int8 (1-byte HBM stream, no
    # f32 N^2 temp).  PyG convention: edge (src -> dst); messages flow
    # src -> dst; duplicate edges / self-loops kept.  Exact for <= 127
    # duplicate edges per (dst, src) pair.
    src, dst = edge_index[0], edge_index[1]
    a = jnp.zeros((n_pad, n_pad), jnp.int8).at[dst, src].add(1)
    deg = jnp.zeros((n_pad, 1), jnp.float32).at[dst, 0].add(1.0)
    # TODO(synk): sparse CSR/PrefetchScalarGridSpec aggregation for large graphs.

    # Per-layer W_l / W_r / b_l, padded lane-dense, bf16 weights / f32 bias.
    in_dims = [f_pad] + [h_pad] * (num_layers - 1)
    stacked = []
    for li, conv in enumerate(params["convs"]):
        d_in = in_dims[li]
        stacked.append((
            _pad2(conv["w_l"], d_in, h_pad, jnp.bfloat16),
            _pad2(conv["w_r"], d_in, h_pad, jnp.bfloat16),
            _pad2(conv["b_l"], 1, h_pad, jnp.float32),
        ))

    # Head weight split per JK branch (order: h_1, ..., h_L).
    head_ws = [
        _pad2(params["lin_w"][li * hidden:(li + 1) * hidden], h_pad, 1, jnp.bfloat16)
        for li in range(num_layers)
    ]
    head_b = params["lin_b"].astype(jnp.float32)

    # Layers 1 .. L-1 (each a single fused agg+proj+ReLU kernel).
    h = _pad2(x, n_pad, f_pad, jnp.bfloat16)
    hs = []
    for li in range(num_layers - 1):
        w_l, w_r, b_l = stacked[li]
        h = _sage_layer(a, deg, h, w_l, w_r, b_l, tile_m, tile_k)
        hs.append(h)                       # dropout == identity (eval mode)

    # Last layer fused with JK('cat') + Linear head + sigmoid.
    w_l, w_r, b_l = stacked[-1]
    probs = _sage_final(a, deg, h, w_l, w_r, b_l, hs[:-1], head_ws, head_b,
                        tile_m, tile_k)
    return probs[:n, 0]                    # torch .view(-1)


# ----------------------------------- main ------------------------------------

if __name__ == "__main__":
    key = jax.random.PRNGKey(0)

    N = 384            # number of graph nodes
    IN_CHANNELS = 16   # input feature dim
    HIDDEN = 32
    NUM_LAYERS = 2
    E = 1024           # number of edges

    key, kx, ks, kd, kp = jax.random.split(key, 5)
    x = jax.random.normal(kx, (N, IN_CHANNELS), jnp.float32)
    edge_index = jnp.stack([
        jax.random.randint(ks, (E,), 0, N, jnp.int32),
        jax.random.randint(kd, (E,), 0, N, jnp.int32),
    ], axis=0)

    params = init_params(kp, IN_CHANNELS, hidden_channels=HIDDEN,
                         num_layers=NUM_LAYERS, jk="cat")

    # Small tiles here so the multi-tile row AND reduction paths are exercised
    # at test size; production defaults are tile_m_max=512 / tile_k_max=1024.
    fwd = jax.jit(functools.partial(graphsage_forward,
                                    tile_m_max=128, tile_k_max=128))
    out = jax.block_until_ready(fwd(params, x, edge_index))

    assert out.shape == (N,)
    assert bool(jnp.all(jnp.isfinite(out)))
    assert bool(jnp.all((out >= 0.0) & (out <= 1.0)))
    print("KERNEL_OK")
</pallas_src>

<mosaic_0001>
module attributes {stable_mosaic.version = 11 : i64} {
  func.func @_sage_layer_kernel(%arg0: i32, %arg1: i32, %arg2: memref<128x128xi8, #tpu.memory_space<vmem>>, %arg3: memref<128x1xf32, #tpu.memory_space<vmem>>, %arg4: memref<128x128xbf16, #tpu.memory_space<vmem>>, %arg5: memref<128x128xbf16, #tpu.memory_space<vmem>>, %arg6: memref<128x128xbf16, #tpu.memory_space<vmem>>, %arg7: memref<128x128xbf16, #tpu.memory_space<vmem>>, %arg8: memref<1x128xf32, #tpu.memory_space<vmem>>, %arg9: memref<128x128xbf16, #tpu.memory_space<vmem>>, %arg10: memref<128x128xf32, #tpu.memory_space<vmem>>) attributes {dimension_semantics = [#tpu.dimension_semantics<parallel>, #tpu.dimension_semantics<arbitrary>], iteration_bounds = array<i64: 3, 3>, scalar_prefetch = 0 : i64, scratch_operands = 1 : i64, tpu.core_type = #tpu.core_type<tc>, window_params = [{transform_indices = @transform_0, window_bounds = array<i64: 128, 128>}, {transform_indices = @transform_1, window_bounds = array<i64: 128, 1>}, {transform_indices = @transform_2, window_bounds = array<i64: 128, 128>}, {transform_indices = @transform_3, window_bounds = array<i64: 128, 128>}, {pipeline_mode = #tpu.pipeline_mode<synchronous>, transform_indices = @transform_4, window_bounds = array<i64: 128, 128>}, {pipeline_mode = #tpu.pipeline_mode<synchronous>, transform_indices = @transform_5, window_bounds = array<i64: 128, 128>}, {pipeline_mode = #tpu.pipeline_mode<synchronous>, transform_indices = @transform_6, window_bounds = array<i64: 1, 128>}, {transform_indices = @transform_7, window_bounds = array<i64: 128, 128>}]} {
    %c0_i32 = arith.constant 0 : i32
    %0 = arith.cmpi eq, %arg1, %c0_i32 : i32
    %1 = arith.extui %0 : i1 to i32
    %c0_i32_0 = arith.constant 0 : i32
    %2 = arith.cmpi ne, %1, %c0_i32_0 : i32
    scf.if %2 {
      %cst_9 = arith.constant 0.000000e+00 : f32
      %13 = vector.broadcast %cst_9 : f32 to vector<128x128xf32>
      %c0_10 = arith.constant 0 : index
      %c0_11 = arith.constant 0 : index
      %14 = vector.load %arg10[%c0_10, %c0_11] : memref<128x128xf32, #tpu.memory_space<vmem>>, vector<128x128xf32>
      tpu.vector_store %arg10[%c0_10, %c0_11], %13 {strides = array<i32>} : memref<128x128xf32, #tpu.memory_space<vmem>>, vector<128x128xf32>,
    } else {
    }
    %c0 = arith.constant 0 : index
    %c0_1 = arith.constant 0 : index
    %3 = vector.load %arg10[%c0, %c0_1] : memref<128x128xf32, #tpu.memory_space<vmem>>, vector<128x128xf32>
    %c0_2 = arith.constant 0 : index
    %c0_3 = arith.constant 0 : index
    %4 = vector.load %arg2[%c0_2, %c0_3] : memref<128x128xi8, #tpu.memory_space<vmem>>, vector<128x128xi8>
    %5 = arith.sitofp %4 : vector<128x128xi8> to vector<128x128xbf16>
    %c0_4 = arith.constant 0 : index
    %c0_5 = arith.constant 0 : index
    %6 = vector.load %arg5[%c0_4, %c0_5] : memref<128x128xbf16, #tpu.memory_space<vmem>>, vector<128x128xbf16>
    %cst = arith.constant dense<0.000000e+00> : vector<128x128xf32>
    %7 = tpu.matmul %5, %6, %cst {dimension_numbers = #tpu.dot_dimension_numbers<[1], [0], [0], [1], [0, 0, 1, 1], [], []>} : vector<128x128xbf16>, vector<128x128xbf16>, vector<128x128xf32> -> vector<128x128xf32>
    %8 = arith.addf %3, %7 : vector<128x128xf32>
    %c0_6 = arith.constant 0 : index
    %c0_7 = arith.constant 0 : index
    %9 = vector.load %arg10[%c0_6, %c0_7] : memref<128x128xf32, #tpu.memory_space<vmem>>, vector<128x128xf32>
    tpu.vector_store %arg10[%c0_6, %c0_7], %8 {strides = array<i32>} : memref<128x128xf32, #tpu.memory_space<vmem>>, vector<128x128xf32>,
    %c2_i32 = arith.constant 2 : i32
    %10 = arith.cmpi eq, %arg1, %c2_i32 : i32
    %11 = arith.extui %10 : i1 to i32
    %c0_i32_8 = arith.constant 0 : i32
    %12 = arith.cmpi ne, %11, %c0_i32_8 : i32
    scf.if %12 {
      %c0_9 = arith.constant 0 : index
      %c0_10 = arith.constant 0 : index
      %13 = vector.load %arg3[%c0_9, %c0_10] : memref<128x1xf32, #tpu.memory_space<vmem>>, vector<128x1xf32>
      %cst_11 = arith.constant 1.000000e+00 : f32
      %14 = vector.broadcast %cst_11 : f32 to vector<128x1xf32>
      %15 = arith.maximumf %13, %14 : vector<128x1xf32>
      %16 = tpu.reciprocal %15 {approx = true} : vector<128x1xf32> -> vector<128x1xf32>
      %c0_12 = arith.constant 0 : index
      %c0_13 = arith.constant 0 : index
      %17 = vector.load %arg10[%c0_12, %c0_13] : memref<128x128xf32, #tpu.memory_space<vmem>>, vector<128x128xf32>
      %18 = vector.broadcast %16 : vector<128x1xf32> to vector<128x128xf32>
      %19 = arith.mulf %17, %18 : vector<128x128xf32>
      %20 = arith.truncf %19 : vector<128x128xf32> to vector<128x128xbf16>
      %c0_14 = arith.constant 0 : index
      %c0_15 = arith.constant 0 : index
      %21 = vector.load %arg6[%c0_14, %c0_15] : memref<128x128xbf16, #tpu.memory_space<vmem>>, vector<128x128xbf16>
      %cst_16 = arith.constant dense<0.000000e+00> : vector<128x128xf32>
      %22 = tpu.matmul %20, %21, %cst_16 {dimension_numbers = #tpu.dot_dimension_numbers<[1], [0], [0], [1], [0, 0, 1, 1], [], []>} : vector<128x128xbf16>, vector<128x128xbf16>, vector<128x128xf32> -> vector<128x128xf32>
      %c0_17 = arith.constant 0 : index
      %c0_18 = arith.constant 0 : index
      %23 = vector.load %arg4[%c0_17, %c0_18] : memref<128x128xbf16, #tpu.memory_space<vmem>>, vector<128x128xbf16>
      %c0_19 = arith.constant 0 : index
      %c0_20 = arith.constant 0 : index
      %24 = vector.load %arg7[%c0_19, %c0_20] : memref<128x128xbf16, #tpu.memory_space<vmem>>, vector<128x128xbf16>
      %cst_21 = arith.constant dense<0.000000e+00> : vector<128x128xf32>
      %25 = tpu.matmul %23, %24, %cst_21 {dimension_numbers = #tpu.dot_dimension_numbers<[1], [0], [0], [1], [0, 0, 1, 1], [], []>} : vector<128x128xbf16>, vector<128x128xbf16>, vector<128x128xf32> -> vector<128x128xf32>
      %26 = arith.addf %22, %25 : vector<128x128xf32>
      %c0_22 = arith.constant 0 : index
      %c0_23 = arith.constant 0 : index
      %27 = vector.load %arg8[%c0_22, %c0_23] : memref<1x128xf32, #tpu.memory_space<vmem>>, vector<1x128xf32>
      %28 = vector.broadcast %27 : vector<1x128xf32> to vector<128x128xf32>
      %29 = arith.addf %26, %28 : vector<128x128xf32>
      %cst_24 = arith.constant 0.000000e+00 : f32
      %30 = vector.broadcast %cst_24 : f32 to vector<128x128xf32>
      %31 = arith.maximumf %29, %30 : vector<128x128xf32>
      %32 = arith.truncf %31 : vector<128x128xf32> to vector<128x128xbf16>
      %c0_25 = arith.constant 0 : index
      %c0_26 = arith.constant 0 : index
      %33 = vector.load %arg9[%c0_25, %c0_26] : memref<128x128xbf16, #tpu.memory_space<vmem>>, vector<128x128xbf16>
      tpu.vector_store %arg9[%c0_25, %c0_26], %32 {strides = array<i32>} : memref<128x128xbf16, #tpu.memory_space<vmem>>, vector<128x128xbf16>,
    } else {
    }
    return
  }
  func.func @transform_0(%arg0: i32, %arg1: i32) -> (i32, i32) {
    %c0_i32 = arith.constant 0 : i32
    return %arg0, %arg1 : i32, i32
  }
  func.func @transform_1(%arg0: i32, %arg1: i32) -> (i32, i32) {
    %c0_i32 = arith.constant 0 : i32
    %c0_i32_0 = arith.constant 0 : i32
    return %arg0, %c0_i32 : i32, i32
  }
  func.func @transform_2(%arg0: i32, %arg1: i32) -> (i32, i32) {
    %c0_i32 = arith.constant 0 : i32
    %c0_i32_0 = arith.constant 0 : i32
    return %arg0, %c0_i32 : i32, i32
  }
  func.func @transform_3(%arg0: i32, %arg1: i32) -> (i32, i32) {
    %c0_i32 = arith.constant 0 : i32
    %c0_i32_0 = arith.constant 0 : i32
    return %arg1, %c0_i32 : i32, i32
  }
  func.func @transform_4(%arg0: i32, %arg1: i32) -> (i32, i32) {
    %c0_i32 = arith.constant 0 : i32
    %c0_i32_0 = arith.constant 0 : i32
    %c0_i32_1 = arith.constant 0 : i32
    return %c0_i32, %c0_i32_0 : i32, i32
  }
  func.func @transform_5(%arg0: i32, %arg1: i32) -> (i32, i32) {
    %c0_i32 = arith.constant 0 : i32
    %c0_i32_0 = arith.constant 0 : i32
    %c0_i32_1 = arith.constant 0 : i32
    return %c0_i32, %c0_i32_0 : i32, i32
  }
  func.func @transform_6(%arg0: i32, %arg1: i32) -> (i32, i32) {
    %c0_i32 = arith.constant 0 : i32
    %c0_i32_0 = arith.constant 0 : i32
    %c0_i32_1 = arith.constant 0 : i32
    return %c0_i32, %c0_i32_0 : i32, i32
  }
  func.func @transform_7(%arg0: i32, %arg1: i32) -> (i32, i32) {
    %c0_i32 = arith.constant 0 : i32
    %c0_i32_0 = arith.constant 0 : i32
    return %arg0, %c0_i32 : i32, i32
  }
}

module attributes {stable_mosaic.version = 11 : i64} {
  func.func @kernel(%arg0: i32, %arg1: i32, %arg2: memref<128x128xi8, #tpu.memory_space<vmem>>, %arg3: memref<128x1xf32, #tpu.memory_space<vmem>>, %arg4: memref<128x128xbf16, #tpu.memory_space<vmem>>, %arg5: memref<128x128xbf16, #tpu.memory_space<vmem>>, %arg6: memref<128x128xbf16, #tpu.memory_space<vmem>>, %arg7: memref<128x128xbf16, #tpu.memory_space<vmem>>, %arg8: memref<1x128xf32, #tpu.memory_space<vmem>>, %arg9: memref<128x1xbf16, #tpu.memory_space<vmem>>, %arg10: memref<128x1xbf16, #tpu.memory_space<vmem>>, %arg11: memref<1x1xf32, #tpu.memory_space<vmem>>, %arg12: memref<128x1xf32, #tpu.memory_space<vmem>>, %arg13: memref<128x128xf32, #tpu.memory_space<vmem>>) attributes {dimension_semantics = [#tpu.dimension_semantics<parallel>, #tpu.dimension_semantics<arbitrary>], iteration_bounds = array<i64: 3, 3>, scalar_prefetch = 0 : i64, scratch_operands = 1 : i64, tpu.core_type = #tpu.core_type<tc>, window_params = [{transform_indices = @transform_0, window_bounds = array<i64: 128, 128>}, {transform_indices = @transform_1, window_bounds = array<i64: 128, 1>}, {transform_indices = @transform_2, window_bounds = array<i64: 128, 128>}, {transform_indices = @transform_3, window_bounds = array<i64: 128, 128>}, {pipeline_mode = #tpu.pipeline_mode<synchronous>, transform_indices = @transform_4, window_bounds = array<i64: 128, 128>}, {pipeline_mode = #tpu.pipeline_mode<synchronous>, transform_indices = @transform_5, window_bounds = array<i64: 128, 128>}, {pipeline_mode = #tpu.pipeline_mode<synchronous>, transform_indices = @transform_6, window_bounds = array<i64: 1, 128>}, {pipeline_mode = #tpu.pipeline_mode<synchronous>, transform_indices = @transform_7, window_bounds = array<i64: 128, 1>}, {pipeline_mode = #tpu.pipeline_mode<synchronous>, transform_indices = @transform_8, window_bounds = array<i64: 128, 1>}, {pipeline_mode = #tpu.pipeline_mode<synchronous>, transform_indices = @transform_9, window_bounds = array<i64: 1, 1>}, {transform_indices = @transform_10, window_bounds = array<i64: 128, 1>}]} {
    %c0_i32 = arith.constant 0 : i32
    %0 = arith.cmpi eq, %arg1, %c0_i32 : i32
    %1 = arith.extui %0 : i1 to i32
    %c0_i32_0 = arith.constant 0 : i32
    %2 = arith.cmpi ne, %1, %c0_i32_0 : i32
    scf.if %2 {
      %cst_9 = arith.constant 0.000000e+00 : f32
      %13 = vector.broadcast %cst_9 : f32 to vector<128x128xf32>
      %c0_10 = arith.constant 0 : index
      %c0_11 = arith.constant 0 : index
      %14 = vector.load %arg13[%c0_10, %c0_11] : memref<128x128xf32, #tpu.memory_space<vmem>>, vector<128x128xf32>
      tpu.vector_store %arg13[%c0_10, %c0_11], %13 {strides = array<i32>} : memref<128x128xf32, #tpu.memory_space<vmem>>, vector<128x128xf32>,
    } else {
    }
    %c0 = arith.constant 0 : index
    %c0_1 = arith.constant 0 : index
    %3 = vector.load %arg13[%c0, %c0_1] : memref<128x128xf32, #tpu.memory_space<vmem>>, vector<128x128xf32>
    %c0_2 = arith.constant 0 : index
    %c0_3 = arith.constant 0 : index
    %4 = vector.load %arg2[%c0_2, %c0_3] : memref<128x128xi8, #tpu.memory_space<vmem>>, vector<128x128xi8>
    %5 = arith.sitofp %4 : vector<128x128xi8> to vector<128x128xbf16>
    %c0_4 = arith.constant 0 : index
    %c0_5 = arith.constant 0 : index
    %6 = vector.load %arg5[%c0_4, %c0_5] : memref<128x128xbf16, #tpu.memory_space<vmem>>, vector<128x128xbf16>
    %cst = arith.constant dense<0.000000e+00> : vector<128x128xf32>
    %7 = tpu.matmul %5, %6, %cst {dimension_numbers = #tpu.dot_dimension_numbers<[1], [0], [0], [1], [0, 0, 1, 1], [], []>} : vector<128x128xbf16>, vector<128x128xbf16>, vector<128x128xf32> -> vector<128x128xf32>
    %8 = arith.addf %3, %7 : vector<128x128xf32>
    %c0_6 = arith.constant 0 : index
    %c0_7 = arith.constant 0 : index
    %9 = vector.load %arg13[%c0_6, %c0_7] : memref<128x128xf32, #tpu.memory_space<vmem>>, vector<128x128xf32>
    tpu.vector_store %arg13[%c0_6, %c0_7], %8 {strides = array<i32>} : memref<128x128xf32, #tpu.memory_space<vmem>>, vector<128x128xf32>,
    %c2_i32 = arith.constant 2 : i32
    %10 = arith.cmpi eq, %arg1, %c2_i32 : i32
    %11 = arith.extui %10 : i1 to i32
    %c0_i32_8 = arith.constant 0 : i32
    %12 = arith.cmpi ne, %11, %c0_i32_8 : i32
    scf.if %12 {
      %c0_9 = arith.constant 0 : index
      %c0_10 = arith.constant 0 : index
      %13 = vector.load %arg3[%c0_9, %c0_10] : memref<128x1xf32, #tpu.memory_space<vmem>>, vector<128x1xf32>
      %cst_11 = arith.constant 1.000000e+00 : f32
      %14 = vector.broadcast %cst_11 : f32 to vector<128x1xf32>
      %15 = arith.maximumf %13, %14 : vector<128x1xf32>
      %16 = tpu.reciprocal %15 {approx = true} : vector<128x1xf32> -> vector<128x1xf32>
      %c0_12 = arith.constant 0 : index
      %c0_13 = arith.constant 0 : index
      %17 = vector.load %arg13[%c0_12, %c0_13] : memref<128x128xf32, #tpu.memory_space<vmem>>, vector<128x128xf32>
      %18 = vector.broadcast %16 : vector<128x1xf32> to vector<128x128xf32>
      %19 = arith.mulf %17, %18 : vector<128x128xf32>
      %20 = arith.truncf %19 : vector<128x128xf32> to vector<128x128xbf16>
      %c0_14 = arith.constant 0 : index
      %c0_15 = arith.constant 0 : index
      %21 = vector.load %arg4[%c0_14, %c0_15] : memref<128x128xbf16, #tpu.memory_space<vmem>>, vector<128x128xbf16>
      %c0_16 = arith.constant 0 : index
      %c0_17 = arith.constant 0 : index
      %22 = vector.load %arg6[%c0_16, %c0_17] : memref<128x128xbf16, #tpu.memory_space<vmem>>, vector<128x128xbf16>
      %cst_18 = arith.constant dense<0.000000e+00> : vector<128x128xf32>
      %23 = tpu.matmul %20, %22, %cst_18 {dimension_numbers = #tpu.dot_dimension_numbers<[1], [0], [0], [1], [0, 0, 1, 1], [], []>} : vector<128x128xbf16>, vector<128x128xbf16>, vector<128x128xf32> -> vector<128x128xf32>
      %c0_19 = arith.constant 0 : index
      %c0_20 = arith.constant 0 : index
      %24 = vector.load %arg7[%c0_19, %c0_20] : memref<128x128xbf16, #tpu.memory_space<vmem>>, vector<128x128xbf16>
      %cst_21 = arith.constant dense<0.000000e+00> : vector<128x128xf32>
      %25 = tpu.matmul %21, %24, %cst_21 {dimension_numbers = #tpu.dot_dimension_numbers<[1], [0], [0], [1], [0, 0, 1, 1], [], []>} : vector<128x128xbf16>, vector<128x128xbf16>, vector<128x128xf32> -> vector<128x128xf32>
      %26 = arith.addf %23, %25 : vector<128x128xf32>
      %c0_22 = arith.constant 0 : index
      %c0_23 = arith.constant 0 : index
      %27 = vector.load %arg8[%c0_22, %c0_23] : memref<1x128xf32, #tpu.memory_space<vmem>>, vector<1x128xf32>
      %28 = vector.broadcast %27 : vector<1x128xf32> to vector<128x128xf32>
      %29 = arith.addf %26, %28 : vector<128x128xf32>
      %cst_24 = arith.constant 0.000000e+00 : f32
      %30 = vector.broadcast %cst_24 : f32 to vector<128x128xf32>
      %31 = arith.maximumf %29, %30 : vector<128x128xf32>
      %32 = arith.truncf %31 : vector<128x128xf32> to vector<128x128xbf16>
      %c0_25 = arith.constant 0 : index
      %c0_26 = arith.constant 0 : index
      %33 = vector.load %arg10[%c0_25, %c0_26] : memref<128x1xbf16, #tpu.memory_space<vmem>>, vector<128x1xbf16>
      %cst_27 = arith.constant dense<0.000000e+00> : vector<128x1xf32>
      %34 = tpu.matmul %32, %33, %cst_27 {dimension_numbers = #tpu.dot_dimension_numbers<[1], [0], [0], [1], [0, 0, 1, 1], [], []>} : vector<128x128xbf16>, vector<128x1xbf16>, vector<128x1xf32> -> vector<128x1xf32>
      %c0_28 = arith.constant 0 : index
      %c0_29 = arith.constant 0 : index
      %35 = vector.load %arg9[%c0_28, %c0_29] : memref<128x1xbf16, #tpu.memory_space<vmem>>, vector<128x1xbf16>
      %cst_30 = arith.constant dense<0.000000e+00> : vector<128x1xf32>
      %36 = tpu.matmul %21, %35, %cst_30 {dimension_numbers = #tpu.dot_dimension_numbers<[1], [0], [0], [1], [0, 0, 1, 1], [], []>} : vector<128x128xbf16>, vector<128x1xbf16>, vector<128x1xf32> -> vector<128x1xf32>
      %37 = arith.addf %34, %36 : vector<128x1xf32>
      %c0_31 = arith.constant 0 : index
      %c0_32 = arith.constant 0 : index
      %38 = vector.load %arg11[%c0_31, %c0_32] : memref<1x1xf32, #tpu.memory_space<vmem>>, vector<1x1xf32>
      %39 = vector.broadcast %38 : vector<1x1xf32> to vector<128x1xf32>
      %40 = arith.addf %37, %39 : vector<128x1xf32>
      %41 = arith.negf %40 : vector<128x1xf32>
      %42 = math.exp %41 : vector<128x1xf32>
      %cst_33 = arith.constant 1.000000e+00 : f32
      %43 = vector.broadcast %cst_33 : f32 to vector<128x1xf32>
      %44 = arith.addf %43, %42 : vector<128x1xf32>
      %45 = arith.divf %43, %44 : vector<128x1xf32>
      %c0_34 = arith.constant 0 : index
      %c0_35 = arith.constant 0 : index
      %46 = vector.load %arg12[%c0_34, %c0_35] : memref<128x1xf32, #tpu.memory_space<vmem>>, vector<128x1xf32>
      tpu.vector_store %arg12[%c0_34, %c0_35], %45 {strides = array<i32>} : memref<128x1xf32, #tpu.memory_space<vmem>>, vector<128x1xf32>,
    } else {
    }
    return
  }
  func.func @transform_0(%arg0: i32, %arg1: i32) -> (i32, i32) {
    %c0_i32 = arith.constant 0 : i32
    return %arg0, %arg1 : i32, i32
  }
  func.func @transform_1(%arg0: i32, %arg1: i32) -> (i32, i32) {
    %c0_i32 = arith.constant 0 : i32
    %c0_i32_0 = arith.constant 0 : i32
    return %arg0, %c0_i32 : i32, i32
  }
  func.func @transform_2(%arg0: i32, %arg1: i32) -> (i32, i32) {
    %c0_i32 = arith.constant 0 : i32
    %c0_i32_0 = arith.constant 0 : i32
    return %arg0, %c0_i32 : i32, i32
  }
  func.func @transform_3(%arg0: i32, %arg1: i32) -> (i32, i32) {
    %c0_i32 = arith.constant 0 : i32
    %c0_i32_0 = arith.constant 0 : i32
    return %arg1, %c0_i32 : i32, i32
  }
  func.func @transform_4(%arg0: i32, %arg1: i32) -> (i32, i32) {
    %c0_i32 = arith.constant 0 : i32
    %c0_i32_0 = arith.constant 0 : i32
    %c0_i32_1 = arith.constant 0 : i32
    return %c0_i32, %c0_i32_0 : i32, i32
  }
  func.func @transform_5(%arg0: i32, %arg1: i32) -> (i32, i32) {
    %c0_i32 = arith.constant 0 : i32
    %c0_i32_0 = arith.constant 0 : i32
    %c0_i32_1 = arith.constant 0 : i32
    return %c0_i32, %c0_i32_0 : i32, i32
  }
  func.func @transform_6(%arg0: i32, %arg1: i32) -> (i32, i32) {
    %c0_i32 = arith.constant 0 : i32
    %c0_i32_0 = arith.constant 0 : i32
    %c0_i32_1 = arith.constant 0 : i32
    return %c0_i32, %c0_i32_0 : i32, i32
  }
  func.func @transform_7(%arg0: i32, %arg1: i32) -> (i32, i32) {
    %c0_i32 = arith.constant 0 : i32
    %c0_i32_0 = arith.constant 0 : i32
    %c0_i32_1 = arith.constant 0 : i32
    return %c0_i32, %c0_i32_0 : i32, i32
  }
  func.func @transform_8(%arg0: i32, %arg1: i32) -> (i32, i32) {
    %c0_i32 = arith.constant 0 : i32
    %c0_i32_0 = arith.constant 0 : i32
    %c0_i32_1 = arith.constant 0 : i32
    return %c0_i32, %c0_i32_0 : i32, i32
  }
  func.func @transform_9(%arg0: i32, %arg1: i32) -> (i32, i32) {
    %c0_i32 = arith.constant 0 : i32
    %c0_i32_0 = arith.constant 0 : i32
    %c0_i32_1 = arith.constant 0 : i32
    return %c0_i32, %c0_i32_0 : i32, i32
  }
  func.func @transform_10(%arg0: i32, %arg1: i32) -> (i32, i32) {
    %c0_i32 = arith.constant 0 : i32
    %c0_i32_0 = arith.constant 0 : i32
    return %arg0, %c0_i32 : i32, i32
  }
}

</mosaic_0001>

<bundles_post_ra>
// kernel: graphsage_forward.2
= control target key start
LH: loop header
LB: loop body
LE: loop exit
PB: predicated region body
PF: predicated region fallthrough
CT: control target
= control target key end

     0   :  { %s1963_s0 = inlined_call_operand.vmem [shape: s8[384,384], index: 0, kind: input, shape index: {}]   ;;  %s1964_s1 = inlined_call_operand.vmem [shape: f32[384,1], index: 1, kind: input, shape index: {}]   ;;  %s1965_s2 = inlined_call_operand.vmem [shape: bf16[384,128], index: 2, kind: input, shape index: {}, may-alias: {2,3}]   ;;  %s1966_s3 = inlined_call_operand.vmem [shape: bf16[384,128], index: 3, kind: input, shape index: {}, may-alias: {2,3}]   ;;  %s1967_s4 = inlined_call_operand.vmem [shape: bf16[128,128], index: 4, kind: input, shape index: {}]   ;;  %s1968_s5 = inlined_call_operand.vmem [shape: bf16[128,128], index: 5, kind: input, shape index: {}]   ;;  %s1969_s6 = inlined_call_operand.vmem [shape: f32[1,128], index: 6, kind: input, shape index: {}]   ;;  %s1970_s7 = inlined_call_operand.vmem [shape: bf16[384,128], index: 7, kind: output, shape index: {}]  }
   0x1   :  { %1972 = sst [smem:[#allocation5_spill]] %s1963_s0 }
   0x2   :  { %s1740_s24 = smov 0   ;;  %s1742_s25 = smov 0  }
   0x3   :  { %s1744_s26 = smov 0   ;;  %s1746_s27 = smov 0  }
   0x4   :  { %s1748_s28 = smov 0   ;;  %s1750_s29 = smov 0  }
   0x5   :  { %s1752_s30 = smov 0  }
   0x6 LB: > { %s26_s8 = sadd.s32 1, %s1688_s28  ;;  %s29_s9 = sadd.s32 1, %s1692_s29  ;;  %s1696_s30 = sphi %s1752_s30, %s17_s30   ;;  %s1692_s29 = sphi %s1750_s29, %s1981_s29   ;;  %s1688_s28 = sphi %s1748_s28, %s1980_s28   ;;  %s1684_s27 = sphi %s1746_s27, %s1979_s27   ;;  %s1680_s26 = sphi %s1744_s26, %s1978_s26   ;;  %s1676_s25 = sphi %s1742_s25, %s1977_s25   ;;  %s1672_s24 = sphi %s1740_s24, %s1976_s24  }
   0x7   : > { %p27_p0 = scmp.ge.s32.totalorder %s26_s8, 3  ;;  %p45_p1 = scmp.ne.s32.totalorder %s1676_s25, %s1672_s24 }
   0x8   : > { %p46_p2 = scmp.eq.s32.totalorder %s1696_s30, 0  ;;  %s38_s13 = sadd.s32 1, %s1676_s25 }
   0x9   : > { %s1983_s8 = smov (%p27_p0, %s26_s8), 0  ;;  %s1985_s9 = smov (!%p27_p0, %s29_s9), %s1692_s29 }
   0xa   : > { %p47_p3 = por %p46_p2, %p45_p1  ;;  %p31_p4 = scmp.ge.s32.totalorder %s1985_s9, 3 }
   0xb   : > { %s34_s10 = ssub.s32 %s1688_s28, %s1983_s8  ;;  %p1281_p6 = scmp.ge.s32.totalorder %s1696_s30, 9 }
   0xc   : > { %s1987_s9 = smov (%p31_p4, %s1985_s9), 0 }
   0xd   : > { %1973 = sst [smem:[#allocation4_spill]] %s1987_s9  ;;  %s33_s11 = ssub.s32 %s1692_s29, %s1987_s9 }
   0xe   : > { %s35_s12 = sor.u32 %s34_s10, %s33_s11  ;;  %247 = sbr.rel (%p1281_p6) target bundleno = 33 (0x21), region = 28 }
   0xf   : > { %p36_p5 = scmp.eq.s32.totalorder %s35_s12, 0 }
  0x11   : > { %s1791_s14 = scalar_select %p36_p5, %s1676_s25, %s38_s13  }
  0x13   : > { %250 = sbr.rel (!%p47_p3) target bundleno = 33 (0x21), region = 32  ;;  %s252_s15 = sand.u32 (%p47_p3), 1, %s1676_s25  }
  0x14   : > { %s1547_s16 = smul.u32 (%p47_p3), 12, %s1692_s29  ;;  %s1282_s17 = sshll.u32 (%p47_p3), %s252_s15, 5 }
  0x15   : > { %s1974_s0 = sld [smem:[#allocation5_spill]] (%p47_p3)  ;;  %s254_s23 = scalar_lea.vmem (%p47_p3), [#allocation3], %s1282_s17 }
  0x16   : > { %s257_s18 = sadd.s32 (%p47_p3), %s1688_s28, %s1547_s16 }
  0x17   : > { %s1285_s19 = sshll.u32 (%p47_p3), %s257_s18, 3 }
  0x1b   : > { %s259_s22 = scalar_lea.vmem %s1974_s0, %s1285_s19 }
  0x1c   : > { %v294_v0 = vld [vmem:[%s259_s22] sm:$0xff]  ;;  %v296_v1 = vld [vmem:[%s259_s22 + $0x18] sm:$0xff]  ;;  %v298_v2 = vld [vmem:[%s259_s22 + $0x30] sm:$0xff] }
  0x1d   : > { %295 = vst [vmem:[%s254_s23] sm:$0xff] %v294_v0  ;;  %v300_v3 = vld [vmem:[%s259_s22 + $0x48] sm:$0xff] }
  0x1e   : > { %297 = vst [vmem:[%s254_s23 + $0x8] sm:$0xff] %v296_v1 }
  0x1f   : > { %299 = vst [vmem:[%s254_s23 + $0x10] sm:$0xff] %v298_v2 }
  0x20   : > { %301 = vst [vmem:[%s254_s23 + $0x18] sm:$0xff] %v300_v3 }
  0x21 PF: > { %p1286_p7 = scmp.ge.s32.totalorder %s1696_s30, 1  ;;  %p333_p8 = scmp.lt.s32.totalorder %s1696_s30, 10 }
  0x23   : > { %p334_p9 = pnand %p1286_p7, %p333_p8 }
  0x24   : > { %s340_s10 = sand.u32 (!%p334_p9), 1, %s1672_s24   ;;  %s1288_s11 = sshll.u32 (!%p334_p9), %s1684_s27, 4 }
  0x25   : > { %337 = sbr.rel (%p334_p9) target bundleno = 595 (0x253), region = 82  ;;  %s1287_s12 = sshll.u32 (!%p334_p9), %s340_s10, 5 }
  0x26   : > { %p388_p10 = scmp.lt.s32.totalorder (!%p334_p9), %s1288_s11, 47  ;;  %s1292_s13 = sshll.u32 (!%p334_p9), %s1680_s26, 4 }
  0x27   : > { %p400_p11 = scmp.lt.s32.totalorder (!%p334_p9), %s1292_s13, 47  ;;  %s1825_s17 = scalar_lea.vmem (!%p334_p9), [#allocation3], %s1287_s12 }
  0x28   : > { %p1296_p12 = scmp.ne.s32.totalorder (!%p334_p9), %s1680_s26, 0 }
  0x2a   : > { %s1989_s11 = smov (!%p388_p10, %s1288_s11), 47  ;;  %s1991_s13 = smov (!%p400_p11, %s1292_s13), 47 }
  0x2b   : > { %s1289_s15 = sshll.u32 %s1989_s11, 3  ;;  %s1291_s16 = sshll.u32 %s1989_s11, 2 }
  0x2c   : > { %s1808_s19 = scalar_lea.vmem %s1964_s1, %s1289_s15  ;;  %s1813_s22 = scalar_lea.vmem %s1965_s2, %s1291_s16 }
  0x2d   : > { %s1818_s23 = scalar_lea.vmem %s1970_s7, %s1291_s16  ;;  %s1293_s10 = sshll.u32 %s1991_s13, 2 }
  0x2e   : > { %s1823_s11 = scalar_lea.vmem %s1966_s3, %s1293_s10  ;;  %414 = sbr.rel (%p1296_p12) target bundleno = 68 (0x44), region = 90 }
  0x33   : > { %v1698_v4 = vmov 0.0  }
  0x34   : > { %415 = vst [vmem:[#allocation2 + $0x30] sm:$0xff] %v1698_v4 }
  0x35   : > { %416 = vst [vmem:[#allocation2] sm:$0xff] %v1698_v4 }
  0x36   : > { %417 = vst [vmem:[#allocation2 + $0x58] sm:$0xff] %v1698_v4 }
  0x37   : > { %418 = vst [vmem:[#allocation2 + $0x18] sm:$0xff] %v1698_v4 }
  0x38   : > { %419 = vst [vmem:[#allocation2 + $0x50] sm:$0xff] %v1698_v4 }
  0x39   : > { %420 = vst [vmem:[#allocation2 + $0x68] sm:$0xff] %v1698_v4 }
  0x3a   : > { %421 = vst [vmem:[#allocation2 + $0x8] sm:$0xff] %v1698_v4 }
  0x3b   : > { %422 = vst [vmem:[#allocation2 + $0x48] sm:$0xff] %v1698_v4 }
  0x3c   : > { %423 = vst [vmem:[#allocation2 + $0x40] sm:$0xff] %v1698_v4 }
  0x3d   : > { %424 = vst [vmem:[#allocation2 + $0x20] sm:$0xff] %v1698_v4 }
  0x3e   : > { %425 = vst [vmem:[#allocation2 + $0x10] sm:$0xff] %v1698_v4 }
  0x3f   : > { %426 = vst [vmem:[#allocation2 + $0x38] sm:$0xff] %v1698_v4 }
  0x40   : > { %427 = vst [vmem:[#allocation2 + $0x60] sm:$0xff] %v1698_v4 }
  0x41   : > { %428 = vst [vmem:[#allocation2 + $0x70] sm:$0xff] %v1698_v4 }
  0x42   : > { %429 = vst [vmem:[#allocation2 + $0x78] sm:$0xff] %v1698_v4 }
  0x43   : > { %430 = vst [vmem:[#allocation2 + $0x28] sm:$0xff] %v1698_v4 }
  0x44 PF: > { %v1435_v5 = vld [vmem:[%s1823_s11 + $0x38] sm:$0xff]  ;;  %v1434_v6 = vld [vmem:[%s1823_s11 + $0x30] sm:$0xff]  ;;  %v1433_v7 = vld [vmem:[%s1823_s11 + $0x28] sm:$0xff]  ;;  %p1329_p13 = scmp.ne.s32.totalorder %s1680_s26, 2 }
  0x45   : > { %555 = vmatpush.bf16.msra.mxu0 %v1435_v5  ;;  %1507 = vmatpush.bf16.msra.mxu1 %v1435_v5  ;;  %v1432_v8 = vld [vmem:[%s1823_s11 + $0x20] sm:$0xff]  ;;  %v1431_v9 = vld [vmem:[%s1823_s11 + $0x18] sm:$0xff]  ;;  %v1430_v10 = vld [vmem:[%s1823_s11 + $0x10] sm:$0xff] }
  0x46   : > { %1508 = vmatpush.bf16.msra.mxu2 %v1435_v5  ;;  %1509 = vmatpush.bf16.msra.mxu3 %v1435_v5  ;;  %v447_v11 = vld [vmem:[%s1825_s17] sm:$0xff]  ;;  %v448_v12 = vld [vmem:[%s1825_s17 + $0x8] sm:$0xff]  ;;  %v449_v13 = vld [vmem:[%s1825_s17 + $0x10] sm:$0xff] }
  0x47   : > { %v450_v14 = vld [vmem:[%s1825_s17 + $0x18] sm:$0xff]  ;;  %v451_v15 = vunpack.c.0.s8 %v447_v11  ;;  %v452_v16 = vunpack.c.1.s8 %v447_v11  ;;  %v455_v17 = vunpack.c.0.s8 %v448_v12  ;;  %v456_v18 = vunpack.c.1.s8 %v448_v12  ;;  %v1429_v19 = vld [vmem:[%s1823_s11 + $0x8] sm:$0xff]  ;;  %v1428_v28 = vld [vmem:[%s1823_s11] sm:$0xff] }
  0x48   : > { %v459_v20 = vunpack.c.0.s8 %v449_v13  ;;  %v460_v21 = vunpack.c.1.s8 %v449_v13  ;;  %v463_v22 = vunpack.c.0.s8 %v450_v14  ;;  %v464_v23 = vunpack.c.1.s8 %v450_v14  ;;  %v431_v57 = vld [vmem:[#allocation2 + $0x30] sm:$0xff]  ;;  %v439_v63 = vld [vmem:[#allocation2 + $0x40] sm:$0xff]  ;;  %v436_v2 = vld [vmem:[#allocation2 + $0x68] sm:$0xff] }
  0x49   : > { %556 = vmatpush.bf16.msra.mxu0 %v1434_v6  ;;  %1510 = vmatpush.bf16.msra.mxu1 %v1434_v6  ;;  %v467_v24 = vcvt.s32.f32 %v451_v15  ;;  %v468_v25 = vcvt.s32.f32 %v452_v16  ;;  %v471_v26 = vcvt.s32.f32 %v455_v17  ;;  %v472_v27 = vcvt.s32.f32 %v456_v18  ;;  %v435_v58 = vld [vmem:[#allocation2 + $0x50] sm:$0xff]  ;;  %v443_v0 = vld [vmem:[#allocation2 + $0x60] sm:$0xff] }
  0x4a   : > { %1511 = vmatpush.bf16.msra.mxu2 %v1434_v6  ;;  %1512 = vmatpush.bf16.msra.mxu3 %v1434_v6  ;;  %v475_v29 = vcvt.s32.f32 %v459_v20  ;;  %v476_v30 = vcvt.s32.f32 %v460_v21  ;;  %v479_v31 = vcvt.s32.f32 %v463_v22  ;;  %v480_v32 = vcvt.s32.f32 %v464_v23  ;;  %v432_v1 = vld [vmem:[#allocation2] sm:$0xff]  ;;  %v441_v23 = vld [vmem:[#allocation2 + $0x10] sm:$0xff] }
  0x4b   : > { %v483_v33 = vpack.c.bf16 %v468_v25, %v467_v24  ;;  %v485_v34 = vpack.c.bf16 %v472_v27, %v471_v26  ;;  %v453_v37 = vunpack.c.2.s8 %v447_v11  ;;  %v454_v38 = vunpack.c.3.s8 %v447_v11  ;;  %v440_v11 = vld [vmem:[#allocation2 + $0x20] sm:$0xff]  ;;  %v445_v24 = vld [vmem:[#allocation2 + $0x78] sm:$0xff]  ;;  %v438_v26 = vld [vmem:[#allocation2 + $0x48] sm:$0xff] }
  0x4c   : > { %v487_v35 = vpack.c.bf16 %v476_v30, %v475_v29  ;;  %v489_v36 = vpack.c.bf16 %v480_v32, %v479_v31  ;;  %v457_v39 = vunpack.c.2.s8 %v448_v12  ;;  %v458_v40 = vunpack.c.3.s8 %v448_v12  ;;  %v444_v12 = vld [vmem:[#allocation2 + $0x70] sm:$0xff]  ;;  %v434_v25 = vld [vmem:[#allocation2 + $0x18] sm:$0xff] }
  0x4d   : > { %557 = vmatpush.bf16.msra.mxu0 %v1433_v7  ;;  %1513 = vmatpush.bf16.msra.mxu1 %v1433_v7  ;;  %v461_v41 = vunpack.c.2.s8 %v449_v13  ;;  %v462_v42 = vunpack.c.3.s8 %v449_v13  ;;  %v465_v43 = vunpack.c.2.s8 %v450_v14  ;;  %v466_v44 = vunpack.c.3.s8 %v450_v14  ;;  %v433_v13 = vld [vmem:[#allocation2 + $0x58] sm:$0xff]  ;;  %v437_v14 = vld [vmem:[#allocation2 + $0x8] sm:$0xff] }
  0x4e   : > { %1514 = vmatpush.bf16.msra.mxu2 %v1433_v7  ;;  %1515 = vmatpush.bf16.msra.mxu3 %v1433_v7  ;;  %v469_v45 = vcvt.s32.f32 %v453_v37  ;;  %v470_v46 = vcvt.s32.f32 %v454_v38  ;;  %v473_v47 = vcvt.s32.f32 %v457_v39  ;;  %v474_v48 = vcvt.s32.f32 %v458_v40 }
  0x4f   : > { %v477_v49 = vcvt.s32.f32 %v461_v41  ;;  %v478_v50 = vcvt.s32.f32 %v462_v42  ;;  %v481_v51 = vcvt.s32.f32 %v465_v43  ;;  %v482_v52 = vcvt.s32.f32 %v466_v44 }
  0x50   : > { %v484_v53 = vpack.c.bf16 %v470_v46, %v469_v45  ;;  %v486_v54 = vpack.c.bf16 %v474_v48, %v473_v47 }
  0x51   : > { %558 = vmatpush.bf16.msra.mxu0 %v1432_v8  ;;  %1516 = vmatpush.bf16.msra.mxu1 %v1432_v8  ;;  %v488_v55 = vpack.c.bf16 %v478_v50, %v477_v49  ;;  %v490_v56 = vpack.c.bf16 %v482_v52, %v481_v51 }
  0x52   : > { %1517 = vmatpush.bf16.msra.mxu2 %v1432_v8  ;;  %1518 = vmatpush.bf16.msra.mxu3 %v1432_v8 }
  0x55   : > { %559 = vmatpush.bf16.msra.mxu0 %v1431_v9  ;;  %1519 = vmatpush.bf16.msra.mxu1 %v1431_v9 }
  0x56   : > { %1520 = vmatpush.bf16.msra.mxu2 %v1431_v9  ;;  %1521 = vmatpush.bf16.msra.mxu3 %v1431_v9 }
  0x59   : > { %560 = vmatpush.bf16.msra.mxu0 %v1430_v10  ;;  %1522 = vmatpush.bf16.msra.mxu1 %v1430_v10 }
  0x5a   : > { %1523 = vmatpush.bf16.msra.mxu2 %v1430_v10  ;;  %1524 = vmatpush.bf16.msra.mxu3 %v1430_v10 }
  0x5d   : > { %561 = vmatpush.bf16.msra.mxu0 %v1429_v19  ;;  %1525 = vmatpush.bf16.msra.mxu1 %v1429_v19 }
  0x5e   : > { %1526 = vmatpush.bf16.msra.mxu2 %v1429_v19  ;;  %1527 = vmatpush.bf16.msra.mxu3 %v1429_v19 }
  0x61   : > { %562 = vmatpush.bf16.msra.mxu0 %v1428_v28  ;;  %1528 = vmatpush.bf16.msra.mxu1 %v1428_v28 }
  0x62   : > { %1529 = vmatpush.bf16.msra.mxu2 %v1428_v28  ;;  %1530 = vmatpush.bf16.msra.mxu3 %v1428_v28 }
  0x64   : > { %563 = vmatmul.bf16.vlgmr.msra.gmra.mxu0 %v483_v33  ;;  %573 = vmatmul.bf16.vlgmr.msra.gmra.mxu1 %v485_v34 }
  0x65   : > { %583 = vmatmul.bf16.vlgmr.msra.gmra.mxu2 %v487_v35  ;;  %593 = vmatmul.bf16.vlgmr.msra.gmra.mxu3 %v489_v36  ;;  %v442_v35 = vld [vmem:[#allocation2 + $0x38] sm:$0xff]  ;;  %v446_v36 = vld [vmem:[#allocation2 + $0x28] sm:$0xff] }
  0x74   : > { %568 = vmatmul.bf16.gmra.mxu0 %v484_v53  ;;  %578 = vmatmul.bf16.gmra.mxu1 %v486_v54 }
  0x75   : > { %588 = vmatmul.bf16.gmra.mxu2 %v488_v55  ;;  %598 = vmatmul.bf16.gmra.mxu3 %v490_v56 }
  0xe1   : > { %v564_v59 = vpop.f32.mrf.mxu0  ;;  %v574_v60 = vpop.f32.mrf.mxu1 }
  0xe2   : > { %v604_v61 = vadd.f32 %v564_v59, %v431_v57  ;;  %v608_v62 = vadd.f32 %v574_v60, %v435_v58 }
  0xe4   : > { %620 = vst [vmem:[#allocation2 + $0x30] sm:$0xff] %v604_v61 }
  0xe5   : > { %624 = vst [vmem:[#allocation2 + $0x50] sm:$0xff] %v608_v62 }
  0xe8   : > { %v584_v3 = vpop.f32.mrf.mxu2  ;;  %v594_v4 = vpop.f32.mrf.mxu3 }
  0xe9   : > { %v612_v5 = vadd.f32 %v584_v3, %v439_v63  ;;  %v616_v6 = vadd.f32 %v594_v4, %v443_v0  ;;  %v566_v7 = vpop.f32.mrf.mxu0  ;;  %v576_v8 = vpop.f32.mrf.mxu1 }
  0xea   : > { %v605_v9 = vadd.f32 %v566_v7, %v432_v1  ;;  %v609_v10 = vadd.f32 %v576_v8, %v436_v2 }
  0xeb   : > { %628 = vst [vmem:[#allocation2 + $0x40] sm:$0xff] %v612_v5 }
  0xec   : > { %632 = vst [vmem:[#allocation2 + $0x60] sm:$0xff] %v616_v6 }
  0xed   : > { %621 = vst [vmem:[#allocation2] sm:$0xff] %v605_v9 }
  0xee   : > { %625 = vst [vmem:[#allocation2 + $0x68] sm:$0xff] %v609_v10 }
  0xf0   : > { %v586_v15 = vpop.f32.mrf.mxu2  ;;  %v596_v16 = vpop.f32.mrf.mxu3 }
  0xf1   : > { %v613_v17 = vadd.f32 %v586_v15, %v440_v11  ;;  %v617_v18 = vadd.f32 %v596_v16, %v444_v12  ;;  %v569_v19 = vpop.f32.mrf.mxu0  ;;  %v579_v20 = vpop.f32.mrf.mxu1 }
  0xf2   : > { %v606_v21 = vadd.f32 %v569_v19, %v433_v13  ;;  %v610_v22 = vadd.f32 %v579_v20, %v437_v14 }
  0xf3   : > { %629 = vst [vmem:[#allocation2 + $0x20] sm:$0xff] %v613_v17 }
  0xf4   : > { %633 = vst [vmem:[#allocation2 + $0x70] sm:$0xff] %v617_v18 }
  0xf5   : > { %622 = vst [vmem:[#allocation2 + $0x58] sm:$0xff] %v606_v21 }
  0xf6   : > { %626 = vst [vmem:[#allocation2 + $0x8] sm:$0xff] %v610_v22 }
  0xf8   : > { %v589_v27 = vpop.f32.mrf.mxu2  ;;  %v599_v28 = vpop.f32.mrf.mxu3 }
  0xf9   : > { %v614_v29 = vadd.f32 %v589_v27, %v441_v23  ;;  %v618_v30 = vadd.f32 %v599_v28, %v445_v24  ;;  %v571_v31 = vpop.f32.mrf.mxu0  ;;  %v581_v32 = vpop.f32.mrf.mxu1 }
  0xfa   : > { %v607_v33 = vadd.f32 %v571_v31, %v434_v25  ;;  %v611_v34 = vadd.f32 %v581_v32, %v438_v26 }
  0xfb   : > { %630 = vst [vmem:[#allocation2 + $0x10] sm:$0xff] %v614_v29 }
  0xfc   : > { %634 = vst [vmem:[#allocation2 + $0x78] sm:$0xff] %v618_v30 }
  0xfd   : > { %623 = vst [vmem:[#allocation2 + $0x18] sm:$0xff] %v607_v33 }
  0xfe   : > { %627 = vst [vmem:[#allocation2 + $0x48] sm:$0xff] %v611_v34 }
 0x100   : > { %v591_v37 = vpop.f32.mrf.mxu2  ;;  %v601_v38 = vpop.f32.mrf.mxu3  ;;  %639 = sbr.rel (%p1329_p13) target bundleno = 595 (0x253), region = 94 }
 0x101   : > { %v615_v39 = vadd.f32 %v591_v37, %v442_v35  ;;  %v619_v40 = vadd.f32 %v601_v38, %v446_v36 }
 0x103   : > { %631 = vst [vmem:[#allocation2 + $0x38] sm:$0xff] %v615_v39 }
 0x104   : > { %635 = vst [vmem:[#allocation2 + $0x28] sm:$0xff] %v619_v40 }
 0x105   : > { %v648_v41 = vld [vmem:[%s1808_s19 + $0x40] sm:$0xff]  ;;  %v650_v43 = vld [vmem:[%s1808_s19 + $0x50] sm:$0xff]  ;;  %v1699_v44 = vmov 0   ;;  %v649_v48 = vld [vmem:[%s1808_s19 + $0x48] sm:$0xff] }
 0x106   : > { %v640_v42 = vld [vmem:[%s1808_s19] sm:$0xff]  ;;  %1607 = vset.pattern.permute.xlu1 %v1699_v44  ;;  %1606 = vset.pattern.permute.xlu0 %v1699_v44  ;;  %v664_v45 = vmax.f32 %v648_v41, 1.0  ;;  %v666_v47 = vmax.f32 %v650_v43, 1.0  ;;  %v641_v49 = vld [vmem:[%s1808_s19 + $0x8] sm:$0xff]  ;;  %v651_v50 = vld [vmem:[%s1808_s19 + $0x58] sm:$0xff]  ;;  %v665_v51 = vmax.f32 %v649_v48, 1.0 }
 0x107   : > { %v656_v46 = vmax.f32 %v640_v42, 1.0  ;;  %1608 = vset.pattern.permute.xlu2 %v1699_v44  ;;  %v657_v52 = vmax.f32 %v641_v49, 1.0  ;;  %v667_v53 = vmax.f32 %v651_v50, 1.0  ;;  %v642_v56 = vld [vmem:[%s1808_s19 + $0x10] sm:$0xff]  ;;  %v643_v58 = vld [vmem:[%s1808_s19 + $0x18] sm:$0xff]  ;;  %v652_v59 = vld [vmem:[%s1808_s19 + $0x60] sm:$0xff] }
 0x108   : > { %1610 = vrcp.f32 %v664_v45  ;;  %v658_v60 = vmax.f32 %v642_v56, 1.0  ;;  %v659_v61 = vmax.f32 %v643_v58, 1.0  ;;  %v668_v63 = vmax.f32 %v652_v59, 1.0  ;;  %v653_v2 = vld [vmem:[%s1808_s19 + $0x68] sm:$0xff]  ;;  %v1459_v3 = vld [vmem:[%s1968_s5 + $0x38] sm:$0xff]  ;;  %v644_v4 = vld [vmem:[%s1808_s19 + $0x20] sm:$0xff] }
 0x109   : > { %1612 = vrcp.f32 %v656_v46  ;;  %v1443_v5 = vld [vmem:[%s1967_s4 + $0x38] sm:$0xff]  ;;  %v645_v6 = vld [vmem:[%s1808_s19 + $0x28] sm:$0xff]  ;;  %1531 = vmatpush.bf16.msra.mxu2 %v1459_v3  ;;  %v1458_v7 = vld [vmem:[%s1968_s5 + $0x30] sm:$0xff]  ;;  %v669_v8 = vmax.f32 %v653_v2, 1.0  ;;  %952 = vmatpush.bf16.msra.mxu0 %v1459_v3  ;;  %v660_v9 = vmax.f32 %v644_v4, 1.0 }
 0x10a   : > { %1614 = vrcp.f32 %v666_v47  ;;  %1049 = vmatpush.bf16.msra.mxu1 %v1443_v5  ;;  %1539 = vmatpush.bf16.msra.mxu3 %v1443_v5  ;;  %v661_v11 = vmax.f32 %v645_v6, 1.0  ;;  %v1457_v13 = vld [vmem:[%s1968_s5 + $0x28] sm:$0xff]  ;;  %v654_v15 = vld [vmem:[%s1808_s19 + $0x70] sm:$0xff]  ;;  %v655_v16 = vld [vmem:[%s1808_s19 + $0x78] sm:$0xff] }
 0x10b   : > { %1616 = vrcp.f32 %v665_v51  ;;  %v646_v17 = vld [vmem:[%s1808_s19 + $0x30] sm:$0xff]  ;;  %v670_v18 = vmax.f32 %v654_v15, 1.0  ;;  %v671_v19 = vmax.f32 %v655_v16, 1.0  ;;  %v647_v24 = vld [vmem:[%s1808_s19 + $0x38] sm:$0xff]  ;;  %v1456_v30 = vld [vmem:[%s1968_s5 + $0x20] sm:$0xff] }
 0x10c   : > { %1618 = vrcp.f32 %v657_v52  ;;  %v662_v21 = vmax.f32 %v646_v17, 1.0  ;;  %v663_v25 = vmax.f32 %v647_v24, 1.0  ;;  %v1442_v31 = vld [vmem:[%s1967_s4 + $0x30] sm:$0xff]  ;;  %v1455_v32 = vld [vmem:[%s1968_s5 + $0x18] sm:$0xff]  ;;  %v1441_v33 = vld [vmem:[%s1967_s4 + $0x28] sm:$0xff] }
 0x10d   : > { %1620 = vrcp.f32 %v667_v53  ;;  %1532 = vmatpush.bf16.msra.mxu2 %v1458_v7  ;;  %953 = vmatpush.bf16.msra.mxu0 %v1458_v7  ;;  %v1454_v34 = vld [vmem:[%s1968_s5 + $0x10] sm:$0xff]  ;;  %v1440_v35 = vld [vmem:[%s1967_s4 + $0x20] sm:$0xff]  ;;  %v1453_v36 = vld [vmem:[%s1968_s5 + $0x8] sm:$0xff] }
 0x10e   : > { %v1611_v54 = vpop.eup %1610  ;;  %1622 = vrcp.f32 %v658_v60  ;;  %1050 = vmatpush.bf16.msra.mxu1 %v1442_v31  ;;  %1540 = vmatpush.bf16.msra.mxu3 %v1442_v31  ;;  %v1439_v37 = vld [vmem:[%s1967_s4 + $0x18] sm:$0xff]  ;;  %v1452_v38 = vld [vmem:[%s1968_s5] sm:$0xff]  ;;  %v1438_v39 = vld [vmem:[%s1967_s4 + $0x10] sm:$0xff] }
 0x10f   : > { %v1613_v55 = vpop.eup %1612  ;;  %746 = vperm.xlu0 %1606, %v1611_v54   ;;  %1624 = vrcp.f32 %v659_v61  ;;  %v1448_v40 = vld [vmem:[%s1813_s22 + $0x20] sm:$0xff]  ;;  %v1437_v41 = vld [vmem:[%s1967_s4 + $0x8] sm:$0xff]  ;;  %v1450_v48 = vld [vmem:[%s1813_s22 + $0x30] sm:$0xff] }
 0x110   : > { %v1615_v57 = vpop.eup %1614  ;;  %706 = vperm.xlu1 %1607, %v1613_v55   ;;  %1626 = vrcp.f32 %v668_v63  ;;  %v1436_v42 = vld [vmem:[%s1967_s4] sm:$0xff]  ;;  %v1449_v44 = vld [vmem:[%s1813_s22 + $0x28] sm:$0xff]  ;;  %v688_v51 = vld [vmem:[#allocation2 + $0x30] sm:$0xff] }
 0x111   : > { %756 = vperm.xlu2 %1608, %v1615_v57   ;;  %v1617_v62 = vpop.eup %1616  ;;  %1628 = vrcp.f32 %v669_v8  ;;  %1533 = vmatpush.bf16.msra.mxu2 %v1457_v13  ;;  %v1444_v43 = vld [vmem:[%s1813_s22] sm:$0xff]  ;;  %v1445_v45 = vld [vmem:[%s1813_s22 + $0x8] sm:$0xff]  ;;  %v1446_v57 = vld [vmem:[%s1813_s22 + $0x10] sm:$0xff] }
 0x112   : > { %v1619_v0 = vpop.eup %1618  ;;  %1630 = vrcp.f32 %v660_v9  ;;  %954 = vmatpush.bf16.msra.mxu0 %v1457_v13  ;;  %1051 = vmatpush.bf16.msra.mxu1 %v1441_v33  ;;  %v696_v49 = vld [vmem:[#allocation2 + $0x40] sm:$0xff]  ;;  %v1451_v63 = vld [vmem:[%s1813_s22 + $0x38] sm:$0xff]  ;;  %v701_v16 = vld [vmem:[#allocation2 + $0x70] sm:$0xff] }
 0x113   : > { %v1621_v1 = vpop.eup %1620  ;;  %1632 = vrcp.f32 %v661_v11  ;;  %1541 = vmatpush.bf16.msra.mxu3 %v1441_v33  ;;  %v697_v50 = vld [vmem:[#allocation2 + $0x20] sm:$0xff]  ;;  %v690_v3 = vld [vmem:[#allocation2 + $0x58] sm:$0xff]  ;;  %v692_v17 = vld [vmem:[#allocation2 + $0x50] sm:$0xff] }
 0x114   : > { %v1623_v10 = vpop.eup %1622  ;;  %1634 = vrcp.f32 %v670_v18  ;;  %v689_v52 = vld [vmem:[#allocation2] sm:$0xff]  ;;  %v691_v5 = vld [vmem:[#allocation2 + $0x18] sm:$0xff] }
 0x115   : > { %v1625_v12 = vpop.eup %1624  ;;  %1636 = vrcp.f32 %v671_v19  ;;  %1534 = vmatpush.bf16.msra.mxu2 %v1456_v30  ;;  %v1447_v11 = vld [vmem:[%s1813_s22 + $0x18] sm:$0xff]  ;;  %v700_v19 = vld [vmem:[#allocation2 + $0x60] sm:$0xff] }
 0x116   : > { %v1627_v14 = vpop.eup %1626  ;;  %1638 = vrcp.f32 %v662_v21  ;;  %955 = vmatpush.bf16.msra.mxu0 %v1456_v30  ;;  %1052 = vmatpush.bf16.msra.mxu1 %v1440_v35  ;;  %v703_v30 = vld [vmem:[#allocation2 + $0x28] sm:$0xff] }
 0x117   : > { %751 = vperm.xlu0 %1606, %v1617_v62   ;;  %v1629_v20 = vpop.eup %1628  ;;  %1640 = vrcp.f32 %v663_v25  ;;  %1542 = vmatpush.bf16.msra.mxu3 %v1440_v35 }
 0x118   : > { %711 = vperm.xlu1 %1607, %v1619_v0   ;;  %v1631_v22 = vpop.eup %1630  ;;  %v698_v0 = vld [vmem:[#allocation2 + $0x10] sm:$0xff] }
 0x119   : > { %761 = vperm.xlu2 %1608, %v1621_v1   ;;  %v1633_v23 = vpop.eup %1632  ;;  %1535 = vmatpush.bf16.msra.mxu2 %v1455_v32  ;;  %v699_v1 = vld [vmem:[#allocation2 + $0x38] sm:$0xff] }
 0x11a   : > { %v1635_v26 = vpop.eup %1634  ;;  %956 = vmatpush.bf16.msra.mxu0 %v1455_v32  ;;  %1053 = vmatpush.bf16.msra.mxu1 %v1439_v37  ;;  %v695_v32 = vld [vmem:[#allocation2 + $0x48] sm:$0xff] }
 0x11b   : > { %v1637_v27 = vpop.eup %1636  ;;  %1543 = vmatpush.bf16.msra.mxu3 %v1439_v37 }
 0x11c   : > { %v1639_v28 = vpop.eup %1638 }
 0x11d   : > { %v1641_v29 = vpop.eup %1640  ;;  %1536 = vmatpush.bf16.msra.mxu2 %v1454_v34 }
 0x11e   : > { %957 = vmatpush.bf16.msra.mxu0 %v1454_v34  ;;  %1054 = vmatpush.bf16.msra.mxu1 %v1438_v39  ;;  %v694_v34 = vld [vmem:[#allocation2 + $0x8] sm:$0xff] }
 0x11f   : > { %716 = vperm.xlu0 %1606, %v1623_v10   ;;  %1544 = vmatpush.bf16.msra.mxu3 %v1438_v39 }
 0x120   : > { %721 = vperm.xlu1 %1607, %v1625_v12  }
 0x121   : > { %766 = vperm.xlu2 %1608, %v1627_v14   ;;  %1537 = vmatpush.bf16.msra.mxu2 %v1453_v36 }
 0x122   : > { %958 = vmatpush.bf16.msra.mxu0 %v1453_v36  ;;  %1055 = vmatpush.bf16.msra.mxu1 %v1437_v41 }
 0x123   : > { %1545 = vmatpush.bf16.msra.mxu3 %v1437_v41 }
 0x125   : > { %1538 = vmatpush.bf16.msra.mxu2 %v1452_v38 }
 0x126   : > { %959 = vmatpush.bf16.msra.mxu0 %v1452_v38  ;;  %1056 = vmatpush.bf16.msra.mxu1 %v1436_v42 }
 0x127   : > { %771 = vperm.xlu0 %1606, %v1629_v20   ;;  %1546 = vmatpush.bf16.msra.mxu3 %v1436_v42  ;;  %v693_v20 = vld [vmem:[#allocation2 + $0x68] sm:$0xff] }
 0x128   : > { %726 = vperm.xlu1 %1607, %v1631_v22   ;;  %980 = vmatmul.bf16.vlgmr.msra.gmra.mxu2 %v1448_v40 }
 0x129   : > { %731 = vperm.xlu2 %1608, %v1633_v23   ;;  %960 = vmatmul.bf16.vlgmr.msra.gmra.mxu0 %v1444_v43 }
 0x12f   : > { %776 = vperm.xlu0 %1606, %v1635_v26  }
 0x130   : > { %781 = vperm.xlu1 %1607, %v1637_v27  }
 0x131   : > { %736 = vperm.xlu2 %1608, %v1639_v28  }
 0x137   : > { %741 = vperm.xlu0 %1606, %v1641_v29   ;;  %v702_v29 = vld [vmem:[#allocation2 + $0x78] sm:$0xff] }
 0x138   : > { %985 = vmatmul.bf16.gmra.mxu2 %v1449_v44 }
 0x139   : > { %965 = vmatmul.bf16.gmra.mxu0 %v1445_v45 }
 0x148   : > { %990 = vmatmul.bf16.gmra.mxu2 %v1450_v48  ;;  %v1916_v48 = vld [vmem:[%s1969_s6] ss:$0 sm:$0xff] }
 0x149   : > { %970 = vmatmul.bf16.gmra.mxu0 %v1446_v57 }
 0x158   : > { %995 = vmatmul.bf16.gmra.mxu2 %v1451_v63 }
 0x159   : > { %975 = vmatmul.bf16.gmra.mxu0 %v1447_v11 }
 0x16b   : > { %v757_v58 = vpop.permute.xlu2 %756 }
 0x16c   : > { %v794_v7 = vmul.f32 %v757_v58, %v698_v0 }
 0x173   : > { %v762_v2 = vpop.permute.xlu2 %761 }
 0x174   : > { %v795_v8 = vmul.f32 %v762_v2, %v699_v1 }
 0x176   : > { %v805_v12 = vpack.c.bf16 %v795_v8, %v794_v7 }
 0x17b   : > { %v767_v14 = vpop.permute.xlu2 %766 }
 0x17c   : > { %v796_v23 = vmul.f32 %v767_v14, %v700_v19 }
 0x181   : > { %v747_v46 = vpop.permute.xlu0 %746 }
 0x182   : > { %v707_v47 = vpop.permute.xlu1 %706  ;;  %v792_v54 = vmul.f32 %v747_v46, %v696_v49 }
 0x183   : > { %v784_v59 = vmul.f32 %v707_v47, %v688_v51  ;;  %v732_v24 = vpop.permute.xlu2 %731 }
 0x184   : > { %v789_v25 = vmul.f32 %v732_v24, %v693_v20 }
 0x189   : > { %v752_v53 = vpop.permute.xlu0 %751 }
 0x18a   : > { %v793_v55 = vmul.f32 %v752_v53, %v697_v50  ;;  %v712_v56 = vpop.permute.xlu1 %711 }
 0x18b   : > { %v785_v60 = vmul.f32 %v712_v56, %v689_v52  ;;  %v737_v35 = vpop.permute.xlu2 %736 }
 0x18c   : > { %v804_v61 = vpack.c.bf16 %v793_v55, %v792_v54  ;;  %v790_v39 = vmul.f32 %v737_v35, %v694_v34 }
 0x18d   : > { %v800_v62 = vpack.c.bf16 %v785_v60, %v784_v59 }
 0x18e   : > { %1077 = vmatmul.bf16.vlgmr.msra.gmra.mxu3 %v804_v61 }
 0x18f   : > { %1057 = vmatmul.bf16.vlgmr.msra.gmra.mxu1 %v800_v62 }
 0x191   : > { %v717_v4 = vpop.permute.xlu0 %716 }
 0x192   : > { %v722_v6 = vpop.permute.xlu1 %721  ;;  %v786_v9 = vmul.f32 %v717_v4, %v690_v3 }
 0x193   : > { %v787_v10 = vmul.f32 %v722_v6, %v691_v5 }
 0x195   : > { %v801_v13 = vpack.c.bf16 %v787_v10, %v786_v9 }
 0x199   : > { %v772_v15 = vpop.permute.xlu0 %771 }
 0x19a   : > { %v727_v18 = vpop.permute.xlu1 %726  ;;  %v797_v21 = vmul.f32 %v772_v15, %v701_v16 }
 0x19b   : > { %v788_v22 = vmul.f32 %v727_v18, %v692_v17 }
 0x19c   : > { %v806_v27 = vpack.c.bf16 %v797_v21, %v796_v23 }
 0x19d   : > { %v802_v28 = vpack.c.bf16 %v789_v25, %v788_v22 }
 0x19e   : > { %1082 = vmatmul.bf16.gmra.mxu3 %v805_v12 }
 0x19f   : > { %1062 = vmatmul.bf16.gmra.mxu1 %v801_v13 }
 0x1a1   : > { %v777_v26 = vpop.permute.xlu0 %776 }
 0x1a2   : > { %v782_v31 = vpop.permute.xlu1 %781  ;;  %v798_v36 = vmul.f32 %v777_v26, %v702_v29 }
 0x1a3   : > { %v799_v37 = vmul.f32 %v782_v31, %v703_v30 }
 0x1a5   : > { %v807_v40 = vpack.c.bf16 %v799_v37, %v798_v36 }
 0x1a6   : > { %v961_v42 = vpop.f32.mrf.mxu0 }
 0x1a9   : > { %v742_v33 = vpop.permute.xlu0 %741 }
 0x1aa   : > { %v791_v38 = vmul.f32 %v742_v33, %v695_v32 }
 0x1ab   : > { %v981_v43 = vpop.f32.mrf.mxu2 }
 0x1ac   : > { %v803_v41 = vpack.c.bf16 %v791_v38, %v790_v39 }
 0x1ae   : > { %1087 = vmatmul.bf16.gmra.mxu3 %v806_v27  ;;  %v963_v44 = vpop.f32.mrf.mxu0 }
 0x1af   : > { %1067 = vmatmul.bf16.gmra.mxu1 %v802_v28 }
 0x1b3   : > { %v983_v46 = vpop.f32.mrf.mxu2 }
 0x1b6   : > { %v966_v50 = vpop.f32.mrf.mxu0 }
 0x1bb   : > { %v986_v56 = vpop.f32.mrf.mxu2 }
 0x1be   : > { %1092 = vmatmul.bf16.gmra.mxu3 %v807_v40  ;;  %v968_v1 = vpop.f32.mrf.mxu0 }
 0x1bf   : > { %1072 = vmatmul.bf16.gmra.mxu1 %v803_v41 }
 0x1c3   : > { %v988_v6 = vpop.f32.mrf.mxu2 }
 0x1c6   : > { %v971_v12 = vpop.f32.mrf.mxu0 }
 0x1cb   : > { %v991_v20 = vpop.f32.mrf.mxu2 }
 0x1ce   : > { %v973_v26 = vpop.f32.mrf.mxu0 }
 0x1d3   : > { %v993_v31 = vpop.f32.mrf.mxu2 }
 0x1d6   : > { %v976_v39 = vpop.f32.mrf.mxu0 }
 0x20c   : > { %v1058_v45 = vpop.f32.mrf.mxu1 }
 0x20d   : > { %v1059_v47 = vadd.f32 %v1058_v45, %v961_v42 }
 0x20f   : > { %v1102_v52 = vadd.f32 %v1916_v48, %v1059_v47 }
 0x211   : > { %v1078_v49 = vpop.f32.mrf.mxu3  ;;  %v1118_v57 = vmax.f32 %v1102_v52, 0.0 }
 0x212   : > { %v1079_v54 = vadd.f32 %v1078_v49, %v981_v43 }
 0x214   : > { %v1060_v51 = vpop.f32.mrf.mxu1  ;;  %v1110_v60 = vadd.f32 %v1916_v48, %v1079_v54 }
 0x215   : > { %v1061_v53 = vadd.f32 %v1060_v51, %v963_v44  ;;  %v978_v51 = vpop.f32.mrf.mxu0 }
 0x216   : > { %v1126_v2 = vmax.f32 %v1110_v60, 0.0 }
 0x217   : > { %v1103_v55 = vadd.f32 %v1916_v48, %v1061_v53 }
 0x219   : > { %v1119_v58 = vmax.f32 %v1103_v55, 0.0  ;;  %v1080_v59 = vpop.f32.mrf.mxu3 }
 0x21a   : > { %v1081_v61 = vadd.f32 %v1080_v59, %v983_v46  ;;  %v996_v46 = vpop.f32.mrf.mxu2 }
 0x21b   : > { %v1463_v62 = vpack.c.bf16 %v1119_v58, %v1118_v57 }
 0x21c   : > { %v1111_v63 = vadd.f32 %v1916_v48, %v1081_v61  ;;  %v1063_v0 = vpop.f32.mrf.mxu1 }
 0x21d   : > { %1464 = vst [vmem:[%s1818_s23] sm:$0xff] %v1463_v62   ;;  %v1064_v5 = vadd.f32 %v1063_v0, %v966_v50 }
 0x21e   : > { %v1127_v3 = vmax.f32 %v1111_v63, 0.0 }
 0x21f   : > { %v1104_v9 = vadd.f32 %v1916_v48, %v1064_v5 }
 0x220   : > { %v1483_v4 = vpack.c.bf16 %v1127_v3, %v1126_v2 }
 0x221   : > { %v1083_v7 = vpop.f32.mrf.mxu3  ;;  %v1120_v14 = vmax.f32 %v1104_v9, 0.0 }
 0x222   : > { %1503 = vst [vmem:[%s1818_s23 + $0x20] sm:$0xff] %v1483_v4   ;;  %v1084_v11 = vadd.f32 %v1083_v7, %v986_v56  ;;  %v998_v58 = vpop.f32.mrf.mxu2 }
 0x224   : > { %v1065_v8 = vpop.f32.mrf.mxu1  ;;  %v1112_v17 = vadd.f32 %v1916_v48, %v1084_v11 }
 0x225   : > { %v1066_v10 = vadd.f32 %v1065_v8, %v968_v1 }
 0x226   : > { %v1128_v23 = vmax.f32 %v1112_v17, 0.0 }
 0x227   : > { %v1105_v13 = vadd.f32 %v1916_v48, %v1066_v10 }
 0x229   : > { %v1121_v15 = vmax.f32 %v1105_v13, 0.0  ;;  %v1085_v16 = vpop.f32.mrf.mxu3 }
 0x22a   : > { %v1086_v18 = vadd.f32 %v1085_v16, %v988_v6 }
 0x22b   : > { %v1468_v19 = vpack.c.bf16 %v1121_v15, %v1120_v14 }
 0x22c   : > { %v1113_v21 = vadd.f32 %v1916_v48, %v1086_v18  ;;  %v1068_v22 = vpop.f32.mrf.mxu1 }
 0x22d   : > { %1500 = vst [vmem:[%s1818_s23 + $0x8] sm:$0xff] %v1468_v19   ;;  %v1069_v27 = vadd.f32 %v1068_v22, %v971_v12 }
 0x22e   : > { %v1129_v24 = vmax.f32 %v1113_v21, 0.0 }
 0x22f   : > { %v1106_v30 = vadd.f32 %v1916_v48, %v1069_v27 }
 0x230   : > { %v1488_v25 = vpack.c.bf16 %v1129_v24, %v1128_v23 }
 0x231   : > { %v1088_v28 = vpop.f32.mrf.mxu3  ;;  %v1122_v35 = vmax.f32 %v1106_v30, 0.0 }
 0x232   : > { %1504 = vst [vmem:[%s1818_s23 + $0x28] sm:$0xff] %v1488_v25   ;;  %v1089_v33 = vadd.f32 %v1088_v28, %v991_v20 }
 0x234   : > { %v1070_v29 = vpop.f32.mrf.mxu1  ;;  %v1114_v38 = vadd.f32 %v1916_v48, %v1089_v33 }
 0x235   : > { %v1071_v32 = vadd.f32 %v1070_v29, %v973_v26 }
 0x236   : > { %v1130_v44 = vmax.f32 %v1114_v38, 0.0 }
 0x237   : > { %v1107_v34 = vadd.f32 %v1916_v48, %v1071_v32 }
 0x239   : > { %v1123_v36 = vmax.f32 %v1107_v34, 0.0  ;;  %v1090_v37 = vpop.f32.mrf.mxu3 }
 0x23a   : > { %v1091_v40 = vadd.f32 %v1090_v37, %v993_v31 }
 0x23b   : > { %v1473_v41 = vpack.c.bf16 %v1123_v36, %v1122_v35 }
 0x23c   : > { %v1115_v42 = vadd.f32 %v1916_v48, %v1091_v40  ;;  %v1073_v43 = vpop.f32.mrf.mxu1 }
 0x23d   : > { %1501 = vst [vmem:[%s1818_s23 + $0x10] sm:$0xff] %v1473_v41   ;;  %v1074_v49 = vadd.f32 %v1073_v43, %v976_v39 }
 0x23e   : > { %v1131_v45 = vmax.f32 %v1115_v42, 0.0 }
 0x23f   : > { %v1108_v53 = vadd.f32 %v1916_v48, %v1074_v49 }
 0x240   : > { %v1493_v47 = vpack.c.bf16 %v1131_v45, %v1130_v44 }
 0x241   : > { %v1093_v50 = vpop.f32.mrf.mxu3  ;;  %v1124_v57 = vmax.f32 %v1108_v53, 0.0 }
 0x242   : > { %1505 = vst [vmem:[%s1818_s23 + $0x30] sm:$0xff] %v1493_v47   ;;  %v1094_v55 = vadd.f32 %v1093_v50, %v996_v46 }
 0x244   : > { %v1075_v52 = vpop.f32.mrf.mxu1  ;;  %v1116_v61 = vadd.f32 %v1916_v48, %v1094_v55 }
 0x245   : > { %v1076_v54 = vadd.f32 %v1075_v52, %v978_v51 }
 0x246   : > { %v1132_v1 = vmax.f32 %v1116_v61, 0.0 }
 0x247   : > { %v1109_v56 = vadd.f32 %v1916_v48, %v1076_v54 }
 0x249   : > { %v1125_v59 = vmax.f32 %v1109_v56, 0.0  ;;  %v1095_v60 = vpop.f32.mrf.mxu3 }
 0x24a   : > { %v1096_v62 = vadd.f32 %v1095_v60, %v998_v58 }
 0x24b   : > { %v1478_v63 = vpack.c.bf16 %v1125_v59, %v1124_v57 }
 0x24c   : > { %v1117_v0 = vadd.f32 %v1916_v48, %v1096_v62 }
 0x24d   : > { %1502 = vst [vmem:[%s1818_s23 + $0x18] sm:$0xff] %v1478_v63  }
 0x24e   : > { %v1133_v2 = vmax.f32 %v1117_v0, 0.0 }
 0x250   : > { %v1498_v3 = vpack.c.bf16 %v1133_v2, %v1132_v1 }
 0x252   : > { %1506 = vst [vmem:[%s1818_s23 + $0x38] sm:$0xff] %v1498_v3  }
 0x253 PF: > { %s17_s30 = sadd.s32 1, %s1696_s30   ;;  %s1975_s9 = sld [smem:[#allocation4_spill]] }
 0x254   : > { %p14_p0 = scmp.ge.s32.totalorder %s17_s30, 11   ;;  %s1976_s24 = smov %s1676_s25 }
 0x255   : > { %s1977_s25 = smov %s1791_s14  ;;  %s1978_s26 = smov %s1688_s28 }
 0x256   : > { %s1979_s27 = smov %s1692_s29  ;;  %s1980_s28 = smov %s1983_s8 }
 0x257   :  { %16 = sbr.rel (!%p14_p0) target bundleno = 6 (0x6), region = 138 }
 0x259   : > { %s1981_s29 = smov %s1975_s9 }

// kernel: graphsage_forward.3
= control target key start
LH: loop header
LB: loop body
LE: loop exit
PB: predicated region body
PF: predicated region fallthrough
CT: control target
= control target key end

     0   :  { %s2827_s0 = inlined_call_operand.vmem [shape: s8[384,384], index: 0, kind: input, shape index: {}]   ;;  %s2828_s1 = inlined_call_operand.vmem [shape: f32[384,1], index: 1, kind: input, shape index: {}]   ;;  %s2829_s2 = inlined_call_operand.vmem [shape: bf16[384,128], index: 2, kind: input, shape index: {}, may-alias: {2,3}]   ;;  %s2830_s3 = inlined_call_operand.vmem [shape: bf16[384,128], index: 3, kind: input, shape index: {}, may-alias: {2,3}]   ;;  %s2831_s4 = inlined_call_operand.vmem [shape: bf16[128,128], index: 4, kind: input, shape index: {}]   ;;  %s2832_s5 = inlined_call_operand.vmem [shape: bf16[128,128], index: 5, kind: input, shape index: {}]   ;;  %s2833_s6 = inlined_call_operand.vmem [shape: f32[1,128], index: 6, kind: input, shape index: {}]   ;;  %s2834_s7 = inlined_call_operand.vmem [shape: bf16[128,1], index: 7, kind: input, shape index: {}]   ;;  %s2835_s8 = inlined_call_operand.vmem [shape: bf16[128,1], index: 8, kind: input, shape index: {}]   ;;  %s2836_s9 = inlined_call_operand.<no memory space> [shape: f32[1,1], index: 9, kind: input, shape index: {}]   ;;  %s2837_s10 = inlined_call_operand.vmem [shape: f32[384,1], index: 10, kind: output, shape index: {}]  }
   0x1   :  { %2841 = sst [smem:[#allocation8_spill]] %s2827_s0  ;;  %v15_v0 = vstv %s2836_s9 }
   0x2   :  { %16 = vst [vmem:[#allocation3] sm:$0x1] %v15_v0 }
   0x3   :  { %s2482_s15 = smov 0   ;;  %s2484_s16 = smov 0  }
   0x4   :  { %s2486_s17 = smov 0   ;;  %s2488_s18 = smov 0  }
   0x5   :  { %s2490_s19 = smov 0   ;;  %s2492_s20 = smov 0  }
   0x6   :  { %s2494_s21 = smov 0  }
   0x7 LB: > { %2842 = sst [smem:[#allocation5_spill]] %s2416_s20  ;;  %s31_s9 = sadd.s32 1, %s2412_s19  ;;  %s2420_s21 = sphi %s2494_s21, %s22_s21   ;;  %s2416_s20 = sphi %s2492_s20, %s2853_s20   ;;  %s2412_s19 = sphi %s2490_s19, %s2852_s19   ;;  %s2408_s18 = sphi %s2488_s18, %s2846_s18   ;;  %s2404_s17 = sphi %s2486_s17, %s2851_s17   ;;  %s2400_s16 = sphi %s2484_s16, %s2850_s16   ;;  %s2396_s15 = sphi %s2482_s15, %s2849_s15  }
   0x8   : > { %p32_p0 = scmp.ge.s32.totalorder %s31_s9, 3  ;;  %s34_s22 = sadd.s32 1, %s2416_s20 }
   0x9   : > { %p50_p1 = scmp.ne.s32.totalorder %s2400_s16, %s2396_s15  ;;  %p51_p2 = scmp.eq.s32.totalorder %s2420_s21, 0 }
   0xa   : > { %s2855_s9 = smov (%p32_p0, %s31_s9), 0  ;;  %s2857_s22 = smov (!%p32_p0, %s34_s22), %s2416_s20 }
   0xb   : > { %2843 = sst [smem:[#allocation6_spill]] %s2855_s9  ;;  %p52_p3 = por %p51_p2, %p50_p1 }
   0xc   : > { %p36_p4 = scmp.ge.s32.totalorder %s2857_s22, 3  ;;  %s39_s23 = ssub.s32 %s2412_s19, %s2855_s9 }
   0xd   : > { %s43_s26 = sadd.s32 1, %s2400_s16  ;;  %p1907_p6 = scmp.ge.s32.totalorder %s2420_s21, 9 }
   0xe   : > { %s2859_s22 = smov (%p36_p4, %s2857_s22), 0 }
   0xf   : > { %2844 = sst [smem:[#allocation7_spill]] %s2859_s22  ;;  %s38_s24 = ssub.s32 %s2416_s20, %s2859_s22 }
  0x10   : > { %s40_s25 = sor.u32 %s39_s23, %s38_s24  ;;  %324 = sbr.rel (%p1907_p6) target bundleno = 35 (0x23), region = 40 }
  0x11   : > { %p41_p5 = scmp.eq.s32.totalorder %s40_s25, 0 }
  0x13   : > { %s2533_s27 = scalar_select %p41_p5, %s2400_s16, %s43_s26  }
  0x15   : > { %327 = sbr.rel (!%p52_p3) target bundleno = 35 (0x23), region = 44  ;;  %s329_s28 = sand.u32 (%p52_p3), 1, %s2400_s16  }
  0x16   : > { %s2206_s29 = smul.u32 (%p52_p3), 12, %s2416_s20  ;;  %s1908_s30 = sshll.u32 (%p52_p3), %s329_s28, 5 }
  0x17   : > { %s2845_s0 = sld [smem:[#allocation8_spill]] (%p52_p3)  ;;  %s331_s24 = scalar_lea.vmem (%p52_p3), [#allocation4], %s1908_s30 }
  0x18   : > { %s334_s11 = sadd.s32 (%p52_p3), %s2412_s19, %s2206_s29 }
  0x19   : > { %s1911_s12 = sshll.u32 (%p52_p3), %s334_s11, 3 }
  0x1d   : > { %s336_s23 = scalar_lea.vmem %s2845_s0, %s1911_s12 }
  0x1e   : > { %v371_v1 = vld [vmem:[%s336_s23] sm:$0xff]  ;;  %v373_v2 = vld [vmem:[%s336_s23 + $0x18] sm:$0xff]  ;;  %v375_v3 = vld [vmem:[%s336_s23 + $0x30] sm:$0xff] }
  0x1f   : > { %372 = vst [vmem:[%s331_s24] sm:$0xff] %v371_v1  ;;  %v377_v4 = vld [vmem:[%s336_s23 + $0x48] sm:$0xff] }
  0x20   : > { %374 = vst [vmem:[%s331_s24 + $0x8] sm:$0xff] %v373_v2 }
  0x21   : > { %376 = vst [vmem:[%s331_s24 + $0x10] sm:$0xff] %v375_v3 }
  0x22   : > { %378 = vst [vmem:[%s331_s24 + $0x18] sm:$0xff] %v377_v4 }
  0x23 PF: > { %p1912_p7 = scmp.ge.s32.totalorder %s2420_s21, 1  ;;  %p410_p8 = scmp.lt.s32.totalorder %s2420_s21, 10 }
  0x25   : > { %p411_p9 = pnand %p1912_p7, %p410_p8 }
  0x26   : > { %s417_s25 = sand.u32 (!%p411_p9), 1, %s2396_s15   ;;  %s1914_s26 = sshll.u32 (!%p411_p9), %s2408_s18, 4 }
  0x27   : > { %414 = sbr.rel (%p411_p9) target bundleno = 828 (0x33c), region = 94  ;;  %s1913_s28 = sshll.u32 (!%p411_p9), %s417_s25, 5 }
  0x28   : > { %p471_p10 = scmp.lt.s32.totalorder (!%p411_p9), %s1914_s26, 47  ;;  %s1918_s29 = sshll.u32 (!%p411_p9), %s2404_s17, 4 }
  0x29   : > { %p483_p11 = scmp.lt.s32.totalorder (!%p411_p9), %s1918_s29, 47  ;;  %s2567_s12 = scalar_lea.vmem (!%p411_p9), [#allocation4], %s1913_s28 }
  0x2a   : > { %p1922_p12 = scmp.ne.s32.totalorder (!%p411_p9), %s2404_s17, 0 }
  0x2c   : > { %s2861_s26 = smov (!%p471_p10, %s1914_s26), 47  ;;  %s2863_s29 = smov (!%p483_p11, %s1918_s29), 47 }
  0x2d   : > { %s1915_s30 = sshll.u32 %s2861_s26, 3  ;;  %s1917_s11 = sshll.u32 %s2861_s26, 2 }
  0x2e   : > { %s2550_s14 = scalar_lea.vmem %s2828_s1, %s1915_s30  ;;  %s2555_s0 = scalar_lea.vmem %s2829_s2, %s1917_s11 }
  0x2f   : > { %s2560_s25 = scalar_lea.vmem %s2837_s10, %s1915_s30  ;;  %s1919_s22 = sshll.u32 %s2863_s29, 2 }
  0x30   : > { %s2565_s26 = scalar_lea.vmem %s2830_s3, %s1919_s22  ;;  %497 = sbr.rel (%p1922_p12) target bundleno = 70 (0x46), region = 102 }
  0x35   : > { %v2422_v5 = vmov 0.0  }
  0x36   : > { %498 = vst [vmem:[#allocation2 + $0x30] sm:$0xff] %v2422_v5 }
  0x37   : > { %499 = vst [vmem:[#allocation2] sm:$0xff] %v2422_v5 }
  0x38   : > { %500 = vst [vmem:[#allocation2 + $0x58] sm:$0xff] %v2422_v5 }
  0x39   : > { %501 = vst [vmem:[#allocation2 + $0x18] sm:$0xff] %v2422_v5 }
  0x3a   : > { %502 = vst [vmem:[#allocation2 + $0x50] sm:$0xff] %v2422_v5 }
  0x3b   : > { %503 = vst [vmem:[#allocation2 + $0x68] sm:$0xff] %v2422_v5 }
  0x3c   : > { %504 = vst [vmem:[#allocation2 + $0x8] sm:$0xff] %v2422_v5 }
  0x3d   : > { %505 = vst [vmem:[#allocation2 + $0x48] sm:$0xff] %v2422_v5 }
  0x3e   : > { %506 = vst [vmem:[#allocation2 + $0x40] sm:$0xff] %v2422_v5 }
  0x3f   : > { %507 = vst [vmem:[#allocation2 + $0x20] sm:$0xff] %v2422_v5 }
  0x40   : > { %508 = vst [vmem:[#allocation2 + $0x10] sm:$0xff] %v2422_v5 }
  0x41   : > { %509 = vst [vmem:[#allocation2 + $0x38] sm:$0xff] %v2422_v5 }
  0x42   : > { %510 = vst [vmem:[#allocation2 + $0x60] sm:$0xff] %v2422_v5 }
  0x43   : > { %511 = vst [vmem:[#allocation2 + $0x70] sm:$0xff] %v2422_v5 }
  0x44   : > { %512 = vst [vmem:[#allocation2 + $0x78] sm:$0xff] %v2422_v5 }
  0x45   : > { %513 = vst [vmem:[#allocation2 + $0x28] sm:$0xff] %v2422_v5 }
  0x46 PF: > { %v2141_v6 = vld [vmem:[%s2565_s26 + $0x38] sm:$0xff]  ;;  %v2140_v7 = vld [vmem:[%s2565_s26 + $0x30] sm:$0xff]  ;;  %v2139_v8 = vld [vmem:[%s2565_s26 + $0x28] sm:$0xff]  ;;  %p1955_p13 = scmp.ne.s32.totalorder %s2404_s17, 2 }
  0x47   : > { %638 = vmatpush.bf16.msra.mxu0 %v2141_v6  ;;  %2182 = vmatpush.bf16.msra.mxu1 %v2141_v6  ;;  %v2138_v9 = vld [vmem:[%s2565_s26 + $0x20] sm:$0xff]  ;;  %v2137_v10 = vld [vmem:[%s2565_s26 + $0x18] sm:$0xff]  ;;  %v2136_v11 = vld [vmem:[%s2565_s26 + $0x10] sm:$0xff] }
  0x48   : > { %2183 = vmatpush.bf16.msra.mxu2 %v2141_v6  ;;  %2184 = vmatpush.bf16.msra.mxu3 %v2141_v6  ;;  %v530_v12 = vld [vmem:[%s2567_s12] sm:$0xff]  ;;  %v531_v13 = vld [vmem:[%s2567_s12 + $0x8] sm:$0xff]  ;;  %v532_v14 = vld [vmem:[%s2567_s12 + $0x10] sm:$0xff] }
  0x49   : > { %v533_v15 = vld [vmem:[%s2567_s12 + $0x18] sm:$0xff]  ;;  %v534_v16 = vunpack.c.0.s8 %v530_v12  ;;  %v535_v17 = vunpack.c.1.s8 %v530_v12  ;;  %v538_v18 = vunpack.c.0.s8 %v531_v13  ;;  %v539_v19 = vunpack.c.1.s8 %v531_v13  ;;  %v2135_v20 = vld [vmem:[%s2565_s26 + $0x8] sm:$0xff]  ;;  %v514_v58 = vld [vmem:[#allocation2 + $0x30] sm:$0xff] }
  0x4a   : > { %v542_v21 = vunpack.c.0.s8 %v532_v14  ;;  %v543_v22 = vunpack.c.1.s8 %v532_v14  ;;  %v546_v23 = vunpack.c.0.s8 %v533_v15  ;;  %v547_v24 = vunpack.c.1.s8 %v533_v15  ;;  %v2134_v29 = vld [vmem:[%s2565_s26] sm:$0xff]  ;;  %v518_v59 = vld [vmem:[#allocation2 + $0x50] sm:$0xff]  ;;  %v519_v3 = vld [vmem:[#allocation2 + $0x68] sm:$0xff] }
  0x4b   : > { %639 = vmatpush.bf16.msra.mxu0 %v2140_v7  ;;  %2185 = vmatpush.bf16.msra.mxu1 %v2140_v7  ;;  %v550_v25 = vcvt.s32.f32 %v534_v16  ;;  %v551_v26 = vcvt.s32.f32 %v535_v17  ;;  %v554_v27 = vcvt.s32.f32 %v538_v18  ;;  %v555_v28 = vcvt.s32.f32 %v539_v19  ;;  %v522_v0 = vld [vmem:[#allocation2 + $0x40] sm:$0xff] }
  0x4c   : > { %2186 = vmatpush.bf16.msra.mxu2 %v2140_v7  ;;  %2187 = vmatpush.bf16.msra.mxu3 %v2140_v7  ;;  %v558_v30 = vcvt.s32.f32 %v542_v21  ;;  %v559_v31 = vcvt.s32.f32 %v543_v22  ;;  %v562_v32 = vcvt.s32.f32 %v546_v23  ;;  %v563_v33 = vcvt.s32.f32 %v547_v24  ;;  %v526_v1 = vld [vmem:[#allocation2 + $0x60] sm:$0xff]  ;;  %v524_v24 = vld [vmem:[#allocation2 + $0x10] sm:$0xff] }
  0x4d   : > { %v566_v34 = vpack.c.bf16 %v551_v26, %v550_v25  ;;  %v568_v35 = vpack.c.bf16 %v555_v28, %v554_v27  ;;  %v536_v38 = vunpack.c.2.s8 %v530_v12  ;;  %v537_v39 = vunpack.c.3.s8 %v530_v12  ;;  %v515_v2 = vld [vmem:[#allocation2] sm:$0xff]  ;;  %v528_v25 = vld [vmem:[#allocation2 + $0x78] sm:$0xff]  ;;  %v521_v27 = vld [vmem:[#allocation2 + $0x48] sm:$0xff] }
  0x4e   : > { %v570_v36 = vpack.c.bf16 %v559_v31, %v558_v30  ;;  %v572_v37 = vpack.c.bf16 %v563_v33, %v562_v32  ;;  %v540_v40 = vunpack.c.2.s8 %v531_v13  ;;  %v541_v41 = vunpack.c.3.s8 %v531_v13  ;;  %v523_v12 = vld [vmem:[#allocation2 + $0x20] sm:$0xff]  ;;  %v527_v13 = vld [vmem:[#allocation2 + $0x70] sm:$0xff]  ;;  %v517_v26 = vld [vmem:[#allocation2 + $0x18] sm:$0xff] }
  0x4f   : > { %640 = vmatpush.bf16.msra.mxu0 %v2139_v8  ;;  %2188 = vmatpush.bf16.msra.mxu1 %v2139_v8  ;;  %v544_v42 = vunpack.c.2.s8 %v532_v14  ;;  %v545_v43 = vunpack.c.3.s8 %v532_v14  ;;  %v548_v44 = vunpack.c.2.s8 %v533_v15  ;;  %v549_v45 = vunpack.c.3.s8 %v533_v15  ;;  %v516_v14 = vld [vmem:[#allocation2 + $0x58] sm:$0xff]  ;;  %v520_v15 = vld [vmem:[#allocation2 + $0x8] sm:$0xff] }
  0x50   : > { %2189 = vmatpush.bf16.msra.mxu2 %v2139_v8  ;;  %2190 = vmatpush.bf16.msra.mxu3 %v2139_v8  ;;  %v552_v46 = vcvt.s32.f32 %v536_v38  ;;  %v553_v47 = vcvt.s32.f32 %v537_v39  ;;  %v556_v48 = vcvt.s32.f32 %v540_v40  ;;  %v557_v49 = vcvt.s32.f32 %v541_v41 }
  0x51   : > { %v560_v50 = vcvt.s32.f32 %v544_v42  ;;  %v561_v51 = vcvt.s32.f32 %v545_v43  ;;  %v564_v52 = vcvt.s32.f32 %v548_v44  ;;  %v565_v53 = vcvt.s32.f32 %v549_v45 }
  0x52   : > { %v567_v54 = vpack.c.bf16 %v553_v47, %v552_v46  ;;  %v569_v55 = vpack.c.bf16 %v557_v49, %v556_v48 }
  0x53   : > { %641 = vmatpush.bf16.msra.mxu0 %v2138_v9  ;;  %2191 = vmatpush.bf16.msra.mxu1 %v2138_v9  ;;  %v571_v56 = vpack.c.bf16 %v561_v51, %v560_v50  ;;  %v573_v57 = vpack.c.bf16 %v565_v53, %v564_v52 }
  0x54   : > { %2192 = vmatpush.bf16.msra.mxu2 %v2138_v9  ;;  %2193 = vmatpush.bf16.msra.mxu3 %v2138_v9 }
  0x57   : > { %642 = vmatpush.bf16.msra.mxu0 %v2137_v10  ;;  %2194 = vmatpush.bf16.msra.mxu1 %v2137_v10 }
  0x58   : > { %2195 = vmatpush.bf16.msra.mxu2 %v2137_v10  ;;  %2196 = vmatpush.bf16.msra.mxu3 %v2137_v10 }
  0x5b   : > { %643 = vmatpush.bf16.msra.mxu0 %v2136_v11  ;;  %2197 = vmatpush.bf16.msra.mxu1 %v2136_v11 }
  0x5c   : > { %2198 = vmatpush.bf16.msra.mxu2 %v2136_v11  ;;  %2199 = vmatpush.bf16.msra.mxu3 %v2136_v11 }
  0x5f   : > { %644 = vmatpush.bf16.msra.mxu0 %v2135_v20  ;;  %2200 = vmatpush.bf16.msra.mxu1 %v2135_v20 }
  0x60   : > { %2201 = vmatpush.bf16.msra.mxu2 %v2135_v20  ;;  %2202 = vmatpush.bf16.msra.mxu3 %v2135_v20 }
  0x63   : > { %645 = vmatpush.bf16.msra.mxu0 %v2134_v29  ;;  %2203 = vmatpush.bf16.msra.mxu1 %v2134_v29 }
  0x64   : > { %2204 = vmatpush.bf16.msra.mxu2 %v2134_v29  ;;  %2205 = vmatpush.bf16.msra.mxu3 %v2134_v29 }
  0x66   : > { %646 = vmatmul.bf16.vlgmr.msra.gmra.mxu0 %v566_v34  ;;  %656 = vmatmul.bf16.vlgmr.msra.gmra.mxu1 %v568_v35 }
  0x67   : > { %666 = vmatmul.bf16.vlgmr.msra.gmra.mxu2 %v570_v36  ;;  %676 = vmatmul.bf16.vlgmr.msra.gmra.mxu3 %v572_v37  ;;  %v525_v36 = vld [vmem:[#allocation2 + $0x38] sm:$0xff]  ;;  %v529_v37 = vld [vmem:[#allocation2 + $0x28] sm:$0xff] }
  0x76   : > { %651 = vmatmul.bf16.gmra.mxu0 %v567_v54  ;;  %661 = vmatmul.bf16.gmra.mxu1 %v569_v55 }
  0x77   : > { %671 = vmatmul.bf16.gmra.mxu2 %v571_v56  ;;  %681 = vmatmul.bf16.gmra.mxu3 %v573_v57 }
  0xe3   : > { %v647_v60 = vpop.f32.mrf.mxu0  ;;  %v657_v61 = vpop.f32.mrf.mxu1 }
  0xe4   : > { %v687_v62 = vadd.f32 %v647_v60, %v514_v58  ;;  %v691_v63 = vadd.f32 %v657_v61, %v518_v59 }
  0xe6   : > { %703 = vst [vmem:[#allocation2 + $0x30] sm:$0xff] %v687_v62 }
  0xe7   : > { %707 = vst [vmem:[#allocation2 + $0x50] sm:$0xff] %v691_v63 }
  0xea   : > { %v667_v4 = vpop.f32.mrf.mxu2  ;;  %v677_v5 = vpop.f32.mrf.mxu3 }
  0xeb   : > { %v695_v6 = vadd.f32 %v667_v4, %v522_v0  ;;  %v699_v7 = vadd.f32 %v677_v5, %v526_v1  ;;  %v649_v8 = vpop.f32.mrf.mxu0  ;;  %v659_v9 = vpop.f32.mrf.mxu1 }
  0xec   : > { %v688_v10 = vadd.f32 %v649_v8, %v515_v2  ;;  %v692_v11 = vadd.f32 %v659_v9, %v519_v3 }
  0xed   : > { %711 = vst [vmem:[#allocation2 + $0x40] sm:$0xff] %v695_v6 }
  0xee   : > { %715 = vst [vmem:[#allocation2 + $0x60] sm:$0xff] %v699_v7 }
  0xef   : > { %704 = vst [vmem:[#allocation2] sm:$0xff] %v688_v10 }
  0xf0   : > { %708 = vst [vmem:[#allocation2 + $0x68] sm:$0xff] %v692_v11 }
  0xf2   : > { %v669_v16 = vpop.f32.mrf.mxu2  ;;  %v679_v17 = vpop.f32.mrf.mxu3 }
  0xf3   : > { %v696_v18 = vadd.f32 %v669_v16, %v523_v12  ;;  %v700_v19 = vadd.f32 %v679_v17, %v527_v13  ;;  %v652_v20 = vpop.f32.mrf.mxu0  ;;  %v662_v21 = vpop.f32.mrf.mxu1 }
  0xf4   : > { %v689_v22 = vadd.f32 %v652_v20, %v516_v14  ;;  %v693_v23 = vadd.f32 %v662_v21, %v520_v15 }
  0xf5   : > { %712 = vst [vmem:[#allocation2 + $0x20] sm:$0xff] %v696_v18 }
  0xf6   : > { %716 = vst [vmem:[#allocation2 + $0x70] sm:$0xff] %v700_v19 }
  0xf7   : > { %705 = vst [vmem:[#allocation2 + $0x58] sm:$0xff] %v689_v22 }
  0xf8   : > { %709 = vst [vmem:[#allocation2 + $0x8] sm:$0xff] %v693_v23 }
  0xfa   : > { %v672_v28 = vpop.f32.mrf.mxu2  ;;  %v682_v29 = vpop.f32.mrf.mxu3 }
  0xfb   : > { %v697_v30 = vadd.f32 %v672_v28, %v524_v24  ;;  %v701_v31 = vadd.f32 %v682_v29, %v528_v25  ;;  %v654_v32 = vpop.f32.mrf.mxu0  ;;  %v664_v33 = vpop.f32.mrf.mxu1 }
  0xfc   : > { %v690_v34 = vadd.f32 %v654_v32, %v517_v26  ;;  %v694_v35 = vadd.f32 %v664_v33, %v521_v27 }
  0xfd   : > { %713 = vst [vmem:[#allocation2 + $0x10] sm:$0xff] %v697_v30 }
  0xfe   : > { %717 = vst [vmem:[#allocation2 + $0x78] sm:$0xff] %v701_v31 }
  0xff   : > { %706 = vst [vmem:[#allocation2 + $0x18] sm:$0xff] %v690_v34 }
 0x100   : > { %710 = vst [vmem:[#allocation2 + $0x48] sm:$0xff] %v694_v35 }
 0x102   : > { %v674_v38 = vpop.f32.mrf.mxu2  ;;  %v684_v39 = vpop.f32.mrf.mxu3  ;;  %722 = sbr.rel (%p1955_p13) target bundleno = 828 (0x33c), region = 106 }
 0x103   : > { %v698_v40 = vadd.f32 %v674_v38, %v525_v36  ;;  %v702_v41 = vadd.f32 %v684_v39, %v529_v37 }
 0x105   : > { %714 = vst [vmem:[#allocation2 + $0x38] sm:$0xff] %v698_v40 }
 0x106   : > { %718 = vst [vmem:[#allocation2 + $0x28] sm:$0xff] %v702_v41 }
 0x107   : > { %v725_v42 = vld [vmem:[%s2550_s14 + $0x10] sm:$0xff]  ;;  %v723_v43 = vld [vmem:[%s2550_s14] sm:$0xff]  ;;  %v2423_v44 = vmov 0   ;;  %v726_v47 = vld [vmem:[%s2550_s14 + $0x18] sm:$0xff]  ;;  %vm1775_vm3 = vcmask 7168  }
 0x108   : > { %2266 = vset.pattern.permute.xlu1 %v2423_v44  ;;  %2265 = vset.pattern.permute.xlu0 %v2423_v44  ;;  %v741_v45 = vmax.f32 %v725_v42, 1.0  ;;  %v739_v46 = vmax.f32 %v723_v43, 1.0  ;;  %v727_v48 = vld [vmem:[%s2550_s14 + $0x20] sm:$0xff]  ;;  %v724_v49 = vld [vmem:[%s2550_s14 + $0x8] sm:$0xff]  ;;  %v742_v50 = vmax.f32 %v726_v47, 1.0  ;;  %v730_v56 = vld [vmem:[%s2550_s14 + $0x38] sm:$0xff] }
 0x109   : > { %2267 = vset.pattern.permute.xlu2 %v2423_v44  ;;  %v743_v51 = vmax.f32 %v727_v48, 1.0  ;;  %v740_v52 = vmax.f32 %v724_v49, 1.0  ;;  %v728_v53 = vld [vmem:[%s2550_s14 + $0x28] sm:$0xff]  ;;  %v729_v57 = vld [vmem:[%s2550_s14 + $0x30] sm:$0xff]  ;;  %v746_v59 = vmax.f32 %v730_v56, 1.0  ;;  %v731_v0 = vld [vmem:[%s2550_s14 + $0x40] sm:$0xff] }
 0x10a   : > { %2270 = vrcp.f32 %v741_v45  ;;  %v744_v58 = vmax.f32 %v728_v53, 1.0  ;;  %v745_v61 = vmax.f32 %v729_v57, 1.0  ;;  %v733_v1 = vld [vmem:[%s2550_s14 + $0x50] sm:$0xff]  ;;  %v732_v2 = vld [vmem:[%s2550_s14 + $0x48] sm:$0xff]  ;;  %v747_v3 = vmax.f32 %v731_v0, 1.0  ;;  %v2165_v4 = vld [vmem:[%s2832_s5 + $0x38] sm:$0xff] }
 0x10b   : > { %2272 = vrcp.f32 %v739_v46  ;;  %v2157_v5 = vld [vmem:[%s2831_s4 + $0x38] sm:$0xff]  ;;  %v749_v7 = vmax.f32 %v733_v1, 1.0  ;;  %1035 = vmatpush.bf16.msra.mxu0 %v2165_v4  ;;  %v2164_v8 = vld [vmem:[%s2832_s5 + $0x30] sm:$0xff]  ;;  %v748_v9 = vmax.f32 %v732_v2, 1.0  ;;  %v2163_v14 = vld [vmem:[%s2832_s5 + $0x28] sm:$0xff] }
 0x10c   : > { %2274 = vrcp.f32 %v742_v50  ;;  %1132 = vmatpush.bf16.msra.mxu1 %v2157_v5  ;;  %v2156_v10 = vld [vmem:[%s2831_s4 + $0x30] sm:$0xff]  ;;  %v734_v13 = vld [vmem:[%s2550_s14 + $0x58] sm:$0xff]  ;;  %v736_v15 = vld [vmem:[%s2550_s14 + $0x68] sm:$0xff] }
 0x10d   : > { %2276 = vrcp.f32 %v743_v51  ;;  %v2155_v16 = vld [vmem:[%s2831_s4 + $0x28] sm:$0xff]  ;;  %v735_v17 = vld [vmem:[%s2550_s14 + $0x60] sm:$0xff]  ;;  %v750_v18 = vmax.f32 %v734_v13, 1.0  ;;  %v752_v20 = vmax.f32 %v736_v15, 1.0  ;;  %v737_v26 = vld [vmem:[%s2550_s14 + $0x70] sm:$0xff] }
 0x10e   : > { %2278 = vrcp.f32 %v740_v52  ;;  %v2162_v21 = vld [vmem:[%s2832_s5 + $0x20] sm:$0xff]  ;;  %v751_v22 = vmax.f32 %v735_v17, 1.0  ;;  %v2161_v27 = vld [vmem:[%s2832_s5 + $0x18] sm:$0xff]  ;;  %v753_v30 = vmax.f32 %v737_v26, 1.0  ;;  %v2160_v32 = vld [vmem:[%s2832_s5 + $0x10] sm:$0xff] }
 0x10f   : > { %2280 = vrcp.f32 %v744_v58  ;;  %1036 = vmatpush.bf16.msra.mxu0 %v2164_v8  ;;  %v2154_v23 = vld [vmem:[%s2831_s4 + $0x20] sm:$0xff]  ;;  %v2153_v28 = vld [vmem:[%s2831_s4 + $0x18] sm:$0xff]  ;;  %v2159_v36 = vld [vmem:[%s2832_s5 + $0x8] sm:$0xff] }
 0x110   : > { %v2271_v54 = vpop.eup %2270  ;;  %2282 = vrcp.f32 %v746_v59  ;;  %1133 = vmatpush.bf16.msra.mxu1 %v2156_v10  ;;  %v738_v29 = vld [vmem:[%s2550_s14 + $0x78] sm:$0xff]  ;;  %v2158_v39 = vld [vmem:[%s2832_s5] sm:$0xff]  ;;  %v2152_v40 = vld [vmem:[%s2831_s4 + $0x10] sm:$0xff] }
 0x111   : > { %v2273_v55 = vpop.eup %2272  ;;  %799 = vperm.xlu1 %2266, %v2271_v54   ;;  %2284 = vrcp.f32 %v745_v61  ;;  %v754_v33 = vmax.f32 %v738_v29, 1.0  ;;  %v2642_v41 = vld [vmem:[%s2555_s0] sm:$0xff]  ;;  %v2151_v42 = vld [vmem:[%s2831_s4 + $0x8] sm:$0xff]  ;;  %v2656_v46 = vld [vmem:[%s2555_s0 + $0x10] sm:$0xff] }
 0x112   : > { %789 = vperm.xlu0 %2265, %v2273_v55   ;;  %v2275_v60 = vpop.eup %2274  ;;  %2286 = vrcp.f32 %v747_v3  ;;  %v2150_v43 = vld [vmem:[%s2831_s4] sm:$0xff]  ;;  %v2652_v44 = vld [vmem:[%s2555_s0 + $0x8] sm:$0xff]  ;;  %v771_v47 = vld [vmem:[#allocation2 + $0x30] sm:$0xff] }
 0x113   : > { %v2277_v62 = vpop.eup %2276  ;;  %2288 = vrcp.f32 %v749_v7  ;;  %1037 = vmatpush.bf16.msra.mxu0 %v2163_v14  ;;  %v772_v48 = vld [vmem:[#allocation2] sm:$0xff]  ;;  %v2660_v54 = vld [vmem:[%s2555_s0 + $0x18] sm:$0xff]  ;;  %v776_v0 = vld [vmem:[#allocation2 + $0x68] sm:$0xff] }
 0x114   : > { %v2279_v63 = vpop.eup %2278  ;;  %809 = vperm.xlu2 %2267, %v2277_v62   ;;  %2290 = vrcp.f32 %v748_v9  ;;  %1134 = vmatpush.bf16.msra.mxu1 %v2155_v16  ;;  %v773_v55 = vld [vmem:[#allocation2 + $0x58] sm:$0xff]  ;;  %v2664_v62 = vld [vmem:[%s2555_s0 + $0x20] sm:$0xff]  ;;  %v2668_v5 = vld [vmem:[%s2555_s0 + $0x28] sm:$0xff] }
 0x115   : > { %v2281_v6 = vpop.eup %2280  ;;  %2292 = vrcp.f32 %v750_v18  ;;  %v774_v56 = vld [vmem:[#allocation2 + $0x18] sm:$0xff]  ;;  %v777_v8 = vld [vmem:[#allocation2 + $0x8] sm:$0xff]  ;;  %v2672_v13 = vld [vmem:[%s2555_s0 + $0x30] sm:$0xff] }
 0x116   : > { %v2283_v11 = vpop.eup %2282  ;;  %2294 = vrcp.f32 %v752_v20  ;;  %v779_v14 = vld [vmem:[#allocation2 + $0x40] sm:$0xff]  ;;  %v782_v26 = vld [vmem:[#allocation2 + $0x38] sm:$0xff] }
 0x117   : > { %v2285_v12 = vpop.eup %2284  ;;  %1038 = vmatpush.bf16.msra.mxu0 %v2162_v21  ;;  %2296 = vrcp.f32 %v751_v22  ;;  %v780_v15 = vld [vmem:[#allocation2 + $0x20] sm:$0xff]  ;;  %v2181_v21 = vld [vmem:[%s2834_s7 + $0x38] sm:$0xff] }
 0x118   : > { %v2287_v19 = vpop.eup %2286  ;;  %1135 = vmatpush.bf16.msra.mxu1 %v2154_v23  ;;  %2298 = vrcp.f32 %v753_v30  ;;  %v2173_v22 = vld [vmem:[%s2835_s8 + $0x38] sm:$0xff]  ;;  %1305 = vmatpush.bf16.msra.mxu2 %v2181_v21  ;;  %v2180_v23 = vld [vmem:[%s2834_s7 + $0x30] sm:$0xff] }
 0x119   : > { %804 = vperm.xlu1 %2266, %v2275_v60   ;;  %v2289_v24 = vpop.eup %2288  ;;  %2300 = vrcp.f32 %v754_v33  ;;  %1402 = vmatpush.bf16.msra.mxu3 %v2173_v22  ;;  %v2178_v33 = vld [vmem:[%s2834_s7 + $0x20] sm:$0xff] }
 0x11a   : > { %794 = vperm.xlu0 %2265, %v2279_v63   ;;  %v2291_v25 = vpop.eup %2290  ;;  %v775_v63 = vld [vmem:[#allocation2 + $0x50] sm:$0xff] }
 0x11b   : > { %v2293_v31 = vpop.eup %2292  ;;  %1039 = vmatpush.bf16.msra.mxu0 %v2161_v27 }
 0x11c   : > { %814 = vperm.xlu2 %2267, %v2281_v6   ;;  %1136 = vmatpush.bf16.msra.mxu1 %v2153_v28  ;;  %v2295_v34 = vpop.eup %2294  ;;  %v778_v6 = vld [vmem:[#allocation2 + $0x48] sm:$0xff]  ;;  %v781_v28 = vld [vmem:[#allocation2 + $0x10] sm:$0xff] }
 0x11d   : > { %v2297_v35 = vpop.eup %2296  ;;  %1306 = vmatpush.bf16.msra.mxu2 %v2180_v23 }
 0x11e   : > { %v2299_v37 = vpop.eup %2298 }
 0x11f   : > { %1040 = vmatpush.bf16.msra.mxu0 %v2160_v32  ;;  %v2301_v38 = vpop.eup %2300 }
 0x120   : > { %1137 = vmatpush.bf16.msra.mxu1 %v2152_v40 }
 0x121   : > { %824 = vperm.xlu1 %2266, %v2283_v11  }
 0x122   : > { %819 = vperm.xlu0 %2265, %v2285_v12  }
 0x123   : > { %1041 = vmatpush.bf16.msra.mxu0 %v2159_v36  ;;  %v2171_v36 = vld [vmem:[%s2835_s8 + $0x28] sm:$0xff] }
 0x124   : > { %829 = vperm.xlu2 %2267, %v2287_v19   ;;  %1138 = vmatpush.bf16.msra.mxu1 %v2151_v42  ;;  %v783_v42 = vld [vmem:[#allocation2 + $0x60] sm:$0xff] }
 0x127   : > { %1042 = vmatpush.bf16.msra.mxu0 %v2158_v39  ;;  %v784_v39 = vld [vmem:[#allocation2 + $0x70] sm:$0xff] }
 0x128   : > { %1139 = vmatpush.bf16.msra.mxu1 %v2150_v43 }
 0x129   : > { %839 = vperm.xlu1 %2266, %v2289_v24   ;;  %v2685_v24 = vld [vmem:[%s2555_s0 + $0x38] sm:$0xff] }
 0x12a   : > { %834 = vperm.xlu0 %2265, %v2291_v25   ;;  %1043 = vmatmul.bf16.vlgmr.msra.gmra.mxu0 %v2642_v41  ;;  %v2179_v25 = vld [vmem:[%s2834_s7 + $0x28] sm:$0xff] }
 0x12b   : > { %1307 = vmatpush.bf16.msra.mxu2 %v2179_v25 }
 0x12c   : > { %844 = vperm.xlu2 %2267, %v2293_v31  }
 0x12f   : > { %1308 = vmatpush.bf16.msra.mxu2 %v2178_v33 }
 0x131   : > { %854 = vperm.xlu1 %2266, %v2295_v34   ;;  %v2172_v34 = vld [vmem:[%s2835_s8 + $0x30] sm:$0xff] }
 0x132   : > { %849 = vperm.xlu0 %2265, %v2297_v35   ;;  %1403 = vmatpush.bf16.msra.mxu3 %v2172_v34  ;;  %v2177_v35 = vld [vmem:[%s2834_s7 + $0x18] sm:$0xff] }
 0x133   : > { %1309 = vmatpush.bf16.msra.mxu2 %v2177_v35 }
 0x134   : > { %859 = vperm.xlu2 %2267, %v2299_v37   ;;  %v2176_v37 = vld [vmem:[%s2834_s7 + $0x10] sm:$0xff] }
 0x136   : > { %1404 = vmatpush.bf16.msra.mxu3 %v2171_v36 }
 0x137   : > { %1310 = vmatpush.bf16.msra.mxu2 %v2176_v37 }
 0x13a   : > { %864 = vperm.xlu0 %2265, %v2301_v38   ;;  %1048 = vmatmul.bf16.gmra.mxu0 %v2652_v44  ;;  %v2170_v38 = vld [vmem:[%s2835_s8 + $0x20] sm:$0xff] }
 0x13b   : > { %1405 = vmatpush.bf16.msra.mxu3 %v2170_v38 }
 0x14a   : > { %1053 = vmatmul.bf16.gmra.mxu0 %v2656_v46 }
 0x15a   : > { %1058 = vmatmul.bf16.gmra.mxu0 %v2660_v54 }
 0x16a   : > { %1063 = vmatmul.bf16.gmra.mxu0 %v2664_v62 }
 0x16e   : > { %v810_v61 = vpop.permute.xlu2 %809 }
 0x16f   : > { %v871_v2 = vmul.f32 %v810_v61, %v775_v63  ;;  %v2166_v61 = vld [vmem:[%s2835_s8] sm:$0xff] }
 0x176   : > { %v815_v1 = vpop.permute.xlu2 %814 }
 0x177   : > { %v872_v3 = vmul.f32 %v815_v1, %v776_v0 }
 0x179   : > { %v885_v4 = vpack.c.bf16 %v872_v3, %v871_v2 }
 0x17a   : > { %1068 = vmatmul.bf16.gmra.mxu0 %v2668_v5 }
 0x17e   : > { %v830_v17 = vpop.permute.xlu2 %829 }
 0x17f   : > { %v875_v18 = vmul.f32 %v830_v17, %v779_v14 }
 0x183   : > { %v800_v53 = vpop.permute.xlu1 %799 }
 0x184   : > { %v790_v45 = vpop.permute.xlu0 %789  ;;  %v869_v58 = vmul.f32 %v800_v53, %v773_v55  ;;  %v2168_v53 = vld [vmem:[%s2835_s8 + $0x10] sm:$0xff]  ;;  %v2167_v55 = vld [vmem:[%s2835_s8 + $0x8] sm:$0xff] }
 0x185   : > { %v867_v50 = vmul.f32 %v790_v45, %v771_v47 }
 0x186   : > { %v845_v27 = vpop.permute.xlu2 %844 }
 0x187   : > { %v878_v30 = vmul.f32 %v845_v27, %v782_v26 }
 0x18a   : > { %1073 = vmatmul.bf16.gmra.mxu0 %v2672_v13 }
 0x18b   : > { %v805_v57 = vpop.permute.xlu1 %804 }
 0x18c   : > { %v795_v49 = vpop.permute.xlu0 %794  ;;  %v870_v59 = vmul.f32 %v805_v57, %v774_v56  ;;  %v786_v56 = vld [vmem:[#allocation2 + $0x28] sm:$0xff] }
 0x18d   : > { %v868_v51 = vmul.f32 %v795_v49, %v772_v48  ;;  %v2175_v48 = vld [vmem:[%s2834_s7 + $0x8] sm:$0xff]  ;;  %v2169_v49 = vld [vmem:[%s2835_s8 + $0x18] sm:$0xff] }
 0x18e   : > { %v884_v60 = vpack.c.bf16 %v870_v59, %v869_v58  ;;  %1311 = vmatpush.bf16.msra.mxu2 %v2175_v48  ;;  %1406 = vmatpush.bf16.msra.mxu3 %v2169_v49  ;;  %v785_v58 = vld [vmem:[#allocation2 + $0x78] sm:$0xff]  ;;  %v860_v59 = vpop.permute.xlu2 %859 }
 0x18f   : > { %v883_v52 = vpack.c.bf16 %v868_v51, %v867_v50  ;;  %v881_v0 = vmul.f32 %v860_v59, %v785_v58 }
 0x191   : > { %1140 = vmatmul.bf16.vlgmr.msra.gmra.mxu1 %v883_v52  ;;  %v2174_v52 = vld [vmem:[%s2834_s7] sm:$0xff] }
 0x192   : > { %1312 = vmatpush.bf16.msra.mxu2 %v2174_v52  ;;  %1407 = vmatpush.bf16.msra.mxu3 %v2168_v53 }
 0x193   : > { %v825_v7 = vpop.permute.xlu1 %824 }
 0x194   : > { %v820_v9 = vpop.permute.xlu0 %819  ;;  %v874_v10 = vmul.f32 %v825_v7, %v778_v6  ;;  %v2732_v6 = vld [vmem:[%s2833_s6] ss:$0 sm:$0xff] }
 0x195   : > { %v873_v11 = vmul.f32 %v820_v9, %v777_v8  ;;  %1313 = vmatmul.bf16.vlgmr.msra.gmra.mxu2 %v2642_v41 }
 0x196   : > { %1408 = vmatpush.bf16.msra.mxu3 %v2167_v55 }
 0x197   : > { %v886_v12 = vpack.c.bf16 %v874_v10, %v873_v11 }
 0x19a   : > { %1078 = vmatmul.bf16.gmra.mxu0 %v2685_v24  ;;  %1409 = vmatpush.bf16.msra.mxu3 %v2166_v61 }
 0x19b   : > { %v840_v29 = vpop.permute.xlu1 %839 }
 0x19c   : > { %v835_v16 = vpop.permute.xlu0 %834  ;;  %v877_v31 = vmul.f32 %v840_v29, %v781_v28 }
 0x19d   : > { %v876_v19 = vmul.f32 %v835_v16, %v780_v15 }
 0x19e   : > { %v888_v32 = vpack.c.bf16 %v878_v30, %v877_v31 }
 0x19f   : > { %v887_v20 = vpack.c.bf16 %v876_v19, %v875_v18 }
 0x1a1   : > { %1145 = vmatmul.bf16.gmra.mxu1 %v884_v60 }
 0x1a3   : > { %v855_v40 = vpop.permute.xlu1 %854 }
 0x1a4   : > { %v850_v43 = vpop.permute.xlu0 %849  ;;  %v880_v45 = vmul.f32 %v855_v40, %v784_v39 }
 0x1a5   : > { %v879_v47 = vmul.f32 %v850_v43, %v783_v42  ;;  %1318 = vmatmul.bf16.gmra.mxu2 %v2652_v44 }
 0x1a7   : > { %v889_v50 = vpack.c.bf16 %v880_v45, %v879_v47  ;;  %v1044_v51 = vpop.f32.mrf.mxu0 }
 0x1ac   : > { %v865_v57 = vpop.permute.xlu0 %864 }
 0x1ad   : > { %v882_v63 = vmul.f32 %v865_v57, %v786_v56 }
 0x1af   : > { %v1046_v60 = vpop.f32.mrf.mxu0  ;;  %v890_v1 = vpack.c.bf16 %v882_v63, %v881_v0 }
 0x1b1   : > { %1150 = vmatmul.bf16.gmra.mxu1 %v885_v4 }
 0x1b5   : > { %1323 = vmatmul.bf16.gmra.mxu2 %v2656_v46 }
 0x1b7   : > { %v1049_v2 = vpop.f32.mrf.mxu0 }
 0x1bf   : > { %v1051_v41 = vpop.f32.mrf.mxu0 }
 0x1c1   : > { %1155 = vmatmul.bf16.gmra.mxu1 %v886_v12 }
 0x1c5   : > { %1328 = vmatmul.bf16.gmra.mxu2 %v2660_v54 }
 0x1c7   : > { %v1054_v10 = vpop.f32.mrf.mxu0 }
 0x1cf   : > { %v1056_v16 = vpop.f32.mrf.mxu0 }
 0x1d1   : > { %1160 = vmatmul.bf16.gmra.mxu1 %v887_v20 }
 0x1d5   : > { %1333 = vmatmul.bf16.gmra.mxu2 %v2664_v62 }
 0x1d7   : > { %v1059_v23 = vpop.f32.mrf.mxu0 }
 0x1df   : > { %v1061_v29 = vpop.f32.mrf.mxu0 }
 0x1e1   : > { %1165 = vmatmul.bf16.gmra.mxu1 %v888_v32 }
 0x1e5   : > { %1338 = vmatmul.bf16.gmra.mxu2 %v2668_v5 }
 0x1e7   : > { %v1064_v36 = vpop.f32.mrf.mxu0 }
 0x1ef   : > { %v1066_v43 = vpop.f32.mrf.mxu0 }
 0x1f1   : > { %1170 = vmatmul.bf16.gmra.mxu1 %v889_v50 }
 0x1f5   : > { %1343 = vmatmul.bf16.gmra.mxu2 %v2672_v13 }
 0x1f7   : > { %v1069_v50 = vpop.f32.mrf.mxu0 }
 0x1ff   : > { %v1071_v58 = vpop.f32.mrf.mxu0 }
 0x201   : > { %1175 = vmatmul.bf16.gmra.mxu1 %v890_v1 }
 0x205   : > { %1348 = vmatmul.bf16.gmra.mxu2 %v2685_v24 }
 0x207   : > { %v1074_v1 = vpop.f32.mrf.mxu0 }
 0x20e   : > { %v1141_v3 = vpop.f32.mrf.mxu1 }
 0x20f   : > { %v1142_v4 = vadd.f32 %v1141_v3, %v1044_v51 }
 0x211   : > { %v1185_v8 = vadd.f32 %v2732_v6, %v1142_v4 }
 0x213   : > { %v1201_v12 = vmax.f32 %v1185_v8, 0.0 }
 0x216   : > { %v1143_v7 = vpop.f32.mrf.mxu1 }
 0x217   : > { %v1144_v9 = vadd.f32 %v1143_v7, %v1046_v60  ;;  %v1076_v7 = vpop.f32.mrf.mxu0 }
 0x219   : > { %v1186_v11 = vadd.f32 %v2732_v6, %v1144_v9 }
 0x21b   : > { %v1202_v14 = vmax.f32 %v1186_v11, 0.0 }
 0x21d   : > { %v1217_v44 = vpack.c.bf16 %v1202_v14, %v1201_v12 }
 0x21e   : > { %v1146_v15 = vpop.f32.mrf.mxu1 }
 0x21f   : > { %1410 = vmatmul.bf16.vlgmr.msra.gmra.mxu3 %v1217_v44  ;;  %v1147_v17 = vadd.f32 %v1146_v15, %v1049_v2  ;;  %v1079_v15 = vpop.f32.mrf.mxu0 }
 0x221   : > { %v1187_v19 = vadd.f32 %v2732_v6, %v1147_v17 }
 0x223   : > { %v1203_v22 = vmax.f32 %v1187_v19, 0.0 }
 0x226   : > { %v1148_v18 = vpop.f32.mrf.mxu1 }
 0x227   : > { %v1149_v20 = vadd.f32 %v1148_v18, %v1051_v41  ;;  %v1314_v18 = vpop.f32.mrf.mxu2  ;;  %v1081_v19 = vpop.f32.mrf.mxu0 }
 0x229   : > { %v1188_v21 = vadd.f32 %v2732_v6, %v1149_v20 }
 0x22b   : > { %v1204_v46 = vmax.f32 %v1188_v21, 0.0 }
 0x22d   : > { %v1218_v25 = vpack.c.bf16 %v1204_v46, %v1203_v22 }
 0x22e   : > { %v1151_v26 = vpop.f32.mrf.mxu1 }
 0x22f   : > { %1415 = vmatmul.bf16.gmra.mxu3 %v1218_v25  ;;  %v1152_v27 = vadd.f32 %v1151_v26, %v1054_v10 }
 0x231   : > { %v1189_v30 = vadd.f32 %v2732_v6, %v1152_v27  ;;  %v1316_v27 = vpop.f32.mrf.mxu2 }
 0x233   : > { %v1205_v33 = vmax.f32 %v1189_v30, 0.0 }
 0x236   : > { %v1153_v28 = vpop.f32.mrf.mxu1 }
 0x237   : > { %v1154_v31 = vadd.f32 %v1153_v28, %v1056_v16 }
 0x239   : > { %v1190_v32 = vadd.f32 %v2732_v6, %v1154_v31  ;;  %v1319_v28 = vpop.f32.mrf.mxu2 }
 0x23b   : > { %v1206_v54 = vmax.f32 %v1190_v32, 0.0 }
 0x23d   : > { %v1219_v34 = vpack.c.bf16 %v1206_v54, %v1205_v33 }
 0x23e   : > { %v1156_v35 = vpop.f32.mrf.mxu1 }
 0x23f   : > { %1420 = vmatmul.bf16.gmra.mxu3 %v1219_v34  ;;  %v1157_v37 = vadd.f32 %v1156_v35, %v1059_v23 }
 0x241   : > { %v1191_v39 = vadd.f32 %v2732_v6, %v1157_v37  ;;  %v1321_v31 = vpop.f32.mrf.mxu2 }
 0x243   : > { %v1207_v45 = vmax.f32 %v1191_v39, 0.0 }
 0x246   : > { %v1158_v38 = vpop.f32.mrf.mxu1 }
 0x247   : > { %v1159_v40 = vadd.f32 %v1158_v38, %v1061_v29  ;;  %v2756_v29 = vld [vmem:[#allocation3] ss:$0 sm:$0xff] }
 0x249   : > { %v1192_v42 = vadd.f32 %v2732_v6, %v1159_v40 }
 0x24b   : > { %v1208_v62 = vmax.f32 %v1192_v42, 0.0 }
 0x24d   : > { %v1220_v47 = vpack.c.bf16 %v1208_v62, %v1207_v45 }
 0x24e   : > { %v1161_v48 = vpop.f32.mrf.mxu1 }
 0x24f   : > { %1425 = vmatmul.bf16.gmra.mxu3 %v1220_v47  ;;  %v1162_v49 = vadd.f32 %v1161_v48, %v1064_v36  ;;  %v1324_v36 = vpop.f32.mrf.mxu2 }
 0x251   : > { %v1193_v52 = vadd.f32 %v2732_v6, %v1162_v49 }
 0x253   : > { %v1209_v56 = vmax.f32 %v1193_v52, 0.0 }
 0x256   : > { %v1163_v51 = vpop.f32.mrf.mxu1 }
 0x257   : > { %v1164_v53 = vadd.f32 %v1163_v51, %v1066_v43  ;;  %v1326_v45 = vpop.f32.mrf.mxu2 }
 0x259   : > { %v1194_v55 = vadd.f32 %v2732_v6, %v1164_v53 }
 0x25b   : > { %v1210_v5 = vmax.f32 %v1194_v55, 0.0 }
 0x25d   : > { %v1221_v57 = vpack.c.bf16 %v1210_v5, %v1209_v56 }
 0x25e   : > { %v1166_v59 = vpop.f32.mrf.mxu1 }
 0x25f   : > { %1430 = vmatmul.bf16.gmra.mxu3 %v1221_v57  ;;  %v1167_v60 = vadd.f32 %v1166_v59, %v1069_v50 }
 0x261   : > { %v1195_v63 = vadd.f32 %v2732_v6, %v1167_v60 }
 0x263   : > { %v1211_v3 = vmax.f32 %v1195_v63, 0.0 }
 0x266   : > { %v1168_v61 = vpop.f32.mrf.mxu1 }
 0x267   : > { %v1169_v0 = vadd.f32 %v1168_v61, %v1071_v58 }
 0x269   : > { %v1196_v2 = vadd.f32 %v2732_v6, %v1169_v0 }
 0x26b   : > { %v1212_v13 = vmax.f32 %v1196_v2, 0.0 }
 0x26d   : > { %v1222_v41 = vpack.c.bf16 %v1212_v13, %v1211_v3 }
 0x26e   : > { %v1171_v4 = vpop.f32.mrf.mxu1 }
 0x26f   : > { %1435 = vmatmul.bf16.gmra.mxu3 %v1222_v41  ;;  %v1172_v8 = vadd.f32 %v1171_v4, %v1074_v1  ;;  %v1329_v1 = vpop.f32.mrf.mxu2 }
 0x271   : > { %v1197_v10 = vadd.f32 %v2732_v6, %v1172_v8 }
 0x273   : > { %v1213_v14 = vmax.f32 %v1197_v10, 0.0 }
 0x276   : > { %v1173_v9 = vpop.f32.mrf.mxu1 }
 0x277   : > { %v1174_v11 = vadd.f32 %v1173_v9, %v1076_v7 }
 0x279   : > { %v1198_v12 = vadd.f32 %v2732_v6, %v1174_v11 }
 0x27b   : > { %v1214_v44 = vmax.f32 %v1198_v12, 0.0 }
 0x27d   : > { %v1223_v24 = vpack.c.bf16 %v1214_v44, %v1213_v14 }
 0x27e   : > { %v1176_v16 = vpop.f32.mrf.mxu1 }
 0x27f   : > { %1440 = vmatmul.bf16.gmra.mxu3 %v1223_v24  ;;  %v1177_v17 = vadd.f32 %v1176_v16, %v1079_v15 }
 0x281   : > { %v1199_v21 = vadd.f32 %v2732_v6, %v1177_v17 }
 0x283   : > { %v1215_v23 = vmax.f32 %v1199_v21, 0.0  ;;  %v1331_v21 = vpop.f32.mrf.mxu2 }
 0x286   : > { %v1178_v20 = vpop.f32.mrf.mxu1 }
 0x287   : > { %v1179_v22 = vadd.f32 %v1178_v20, %v1081_v19 }
 0x289   : > { %v1200_v46 = vadd.f32 %v2732_v6, %v1179_v22 }
 0x28b   : > { %v1216_v25 = vmax.f32 %v1200_v46, 0.0 }
 0x28d   : > { %v1224_v26 = vpack.c.bf16 %v1216_v25, %v1215_v23 }
 0x28f   : > { %1445 = vmatmul.bf16.gmra.mxu3 %v1224_v26 }
 0x2a2   : > { %v1411_v30 = vpop.f32.mrf.mxu3 }
 0x2a3   : > { %v1412_v32 = vadd.f32 %v1411_v30, %v1314_v18 }
 0x2a5   : > { %v1455_v33 = vadd.f32 %v2756_v29, %v1412_v32 }
 0x2a7   : > { %v2116_v54 = vmul.f32 -1.442695, %v1455_v33 }
 0x2a9   : > { %2302 = vpow2.f32 %v2116_v54 }
 0x2aa   : > { %v1413_v34 = vpop.f32.mrf.mxu3 }
 0x2ab   : > { %v1414_v35 = vadd.f32 %v1413_v34, %v1316_v27 }
 0x2ad   : > { %v1456_v6 = vadd.f32 %v2756_v29, %v1414_v35 }
 0x2af   : > { %v2303_v37 = vpop.eup %2302  ;;  %v2117_v38 = vmul.f32 -1.442695, %v1456_v6 }
 0x2b0   : > { %v1519_v39 = vadd.f32 1.0, %v2303_v37 }
 0x2b1   : > { %2304 = vpow2.f32 %v2117_v38 }
 0x2b2   : > { %2306 = vrcp.f32 %v1519_v39  ;;  %v1416_v40 = vpop.f32.mrf.mxu3  ;;  %v1546_v55 = vand.u32 2147483648, %v1519_v39  ;;  %v1544_v5 = vand.u32 2147483647, %v1519_v39  ;;  %vm1540_vm1 = vweird.f32 %v1519_v39 }
 0x2b3   : > { %v1417_v42 = vadd.f32 %v1416_v40, %v1319_v28  ;;  %v1334_v40 = vpop.f32.mrf.mxu2 }
 0x2b4   : > { %v1547_v63 = vor.u32 1.1754944e-38, %v1546_v55  ;;  %vm1545_vm4 = vcmp.eq.f32.partialorder %v1544_v5, 8.507059e+37 }
 0x2b5   : > { %v1457_v43 = vadd.f32 %v2756_v29, %v1417_v42 }
 0x2b7   : > { %v2305_v62 = vpop.eup %2304  ;;  %v2118_v47 = vmul.f32 -1.442695, %v1457_v43 }
 0x2b8   : > { %v2307_v48 = vpop.eup %2306  ;;  %v1520_v49 = vadd.f32 1.0, %v2305_v62 }
 0x2b9   : > { %v1536_v50 = vmul.f32 %v2307_v48, %v1519_v39  ;;  %2308 = vpow2.f32 %v2118_v47  ;;  %vm1541_vm0 = vweird.f32 %v2307_v48 }
 0x2ba   : > { %2310 = vrcp.f32 %v1520_v49  ;;  %v1418_v51 = vpop.f32.mrf.mxu3  ;;  %vm1542_vm2 = vmor %vm1540_vm1, %vm1541_vm0  ;;  %v1561_v8 = vand.u32 2147483648, %v1520_v49  ;;  %v1559_v10 = vand.u32 2147483647, %v1520_v49  ;;  %vm1555_vm6 = vweird.f32 %v1520_v49 }
 0x2bb   : > { %v1537_v52 = vsub.f32 1.0, %v1536_v50  ;;  %v1419_v53 = vadd.f32 %v1418_v51, %v1321_v31 }
 0x2bc   : > { %v1562_v24 = vor.u32 1.1754944e-38, %v1561_v8  ;;  %vm1560_vm8 = vcmp.eq.f32.partialorder %v1559_v10, 8.507059e+37 }
 0x2bd   : > { %v1538_v56 = vmul.f32 %v2307_v48, %v1537_v52  ;;  %v1458_v57 = vadd.f32 %v2756_v29, %v1419_v53 }
 0x2bf   : > { %v2309_v58 = vpop.eup %2308  ;;  %v1539_v59 = vadd.f32 %v2307_v48, %v1538_v56  ;;  %v2119_v60 = vmul.f32 -1.442695, %v1458_v57 }
 0x2c0   : > { %v2311_v61 = vpop.eup %2310  ;;  %v1521_v0 = vadd.f32 1.0, %v2309_v58 }
 0x2c1   : > { %v1543_v2 = vsel %vm1542_vm2, %v2307_v48, %v1539_v59  ;;  %v1551_v3 = vmul.f32 %v2311_v61, %v1520_v49  ;;  %2312 = vpow2.f32 %v2119_v60  ;;  %vm1556_vm5 = vweird.f32 %v2311_v61 }
 0x2c2   : > { %v1548_v13 = vsel %vm1545_vm4, %v1547_v63, %v1543_v2  ;;  %2314 = vrcp.f32 %v1521_v0  ;;  %v1421_v41 = vpop.f32.mrf.mxu3  ;;  %vm1557_vm7 = vmor %vm1555_vm6, %vm1556_vm5  ;;  %v1576_v23 = vand.u32 2147483648, %v1521_v0  ;;  %v1574_v26 = vand.u32 2147483647, %v1521_v0  ;;  %v1336_v63 = vpop.f32.mrf.mxu2 }
 0x2c3   : > { %1776 = vst.msk [vmem:[%s2560_s25] sm:$0xff] %vm1775_vm3, %v1548_v13  ;;  %v1552_v4 = vsub.f32 1.0, %v1551_v3  ;;  %v1422_v7 = vadd.f32 %v1421_v41, %v1324_v36  ;;  %vm1570_vm10 = vweird.f32 %v1521_v0 }
 0x2c4   : > { %v1577_v33 = vor.u32 1.1754944e-38, %v1576_v23  ;;  %vm1575_vm12 = vcmp.eq.f32.partialorder %v1574_v26, 8.507059e+37 }
 0x2c5   : > { %v1553_v9 = vmul.f32 %v2311_v61, %v1552_v4  ;;  %v1459_v11 = vadd.f32 %v2756_v29, %v1422_v7 }
 0x2c7   : > { %v2313_v12 = vpop.eup %2312  ;;  %v1554_v14 = vadd.f32 %v2311_v61, %v1553_v9  ;;  %v2120_v44 = vmul.f32 -1.442695, %v1459_v11 }
 0x2c8   : > { %v2315_v15 = vpop.eup %2314  ;;  %v1522_v16 = vadd.f32 1.0, %v2313_v12 }
 0x2c9   : > { %v1558_v17 = vsel %vm1557_vm7, %v2311_v61, %v1554_v14  ;;  %v1566_v18 = vmul.f32 %v2315_v15, %v1521_v0  ;;  %2316 = vpow2.f32 %v2120_v44  ;;  %vm1571_vm9 = vweird.f32 %v2315_v15 }
 0x2ca   : > { %v1563_v19 = vsel %vm1560_vm8, %v1562_v24, %v1558_v17  ;;  %2318 = vrcp.f32 %v1522_v16  ;;  %v1423_v20 = vpop.f32.mrf.mxu3  ;;  %vm1572_vm11 = vmor %vm1570_vm10, %vm1571_vm9  ;;  %v1591_v39 = vand.u32 2147483648, %v1522_v16  ;;  %v1589_v43 = vand.u32 2147483647, %v1522_v16 }
 0x2cb   : > { %1777 = vst.msk [vmem:[%s2560_s25 + $0x8] sm:$0xff] %vm1775_vm3, %v1563_v19  ;;  %v1567_v22 = vsub.f32 1.0, %v1566_v18  ;;  %v1424_v46 = vadd.f32 %v1423_v20, %v1326_v45  ;;  %vm1585_vm14 = vweird.f32 %v1522_v16 }
 0x2cc   : > { %v1592_v50 = vor.u32 1.1754944e-38, %v1591_v39  ;;  %vm1590_vm0 = vcmp.eq.f32.partialorder %v1589_v43, 8.507059e+37 }
 0x2cd   : > { %v1568_v25 = vmul.f32 %v2315_v15, %v1567_v22  ;;  %v1460_v27 = vadd.f32 %v2756_v29, %v1424_v46 }
 0x2cf   : > { %v2317_v28 = vpop.eup %2316  ;;  %v1569_v30 = vadd.f32 %v2315_v15, %v1568_v25  ;;  %v2121_v31 = vmul.f32 -1.442695, %v1460_v27 }
 0x2d0   : > { %v2319_v32 = vpop.eup %2318  ;;  %v1523_v54 = vadd.f32 1.0, %v2317_v28 }
 0x2d1   : > { %v1573_v34 = vsel %vm1572_vm11, %v2315_v15, %v1569_v30  ;;  %v1581_v35 = vmul.f32 %v2319_v32, %v1522_v16  ;;  %2320 = vpow2.f32 %v2121_v31  ;;  %vm1586_vm13 = vweird.f32 %v2319_v32 }
 0x2d2   : > { %v1578_v36 = vsel %vm1575_vm12, %v1577_v33, %v1573_v34  ;;  %2322 = vrcp.f32 %v1523_v54  ;;  %v1426_v6 = vpop.f32.mrf.mxu3  ;;  %vm1587_vm15 = vmor %vm1585_vm14, %vm1586_vm13  ;;  %v1606_v58 = vand.u32 2147483648, %v1523_v54  ;;  %v1604_v60 = vand.u32 2147483647, %v1523_v54 }
 0x2d3   : > { %1778 = vst.msk [vmem:[%s2560_s25 + $0x10] sm:$0xff] %vm1775_vm3, %v1578_v36  ;;  %v1582_v37 = vsub.f32 1.0, %v1581_v35  ;;  %v1427_v38 = vadd.f32 %v1426_v6, %v1329_v1  ;;  %vm1600_vm2 = vweird.f32 %v1523_v54 }
 0x2d4   : > { %v1607_v13 = vor.u32 1.1754944e-38, %v1606_v58  ;;  %vm1605_vm5 = vcmp.eq.f32.partialorder %v1604_v60, 8.507059e+37 }
 0x2d5   : > { %v1583_v42 = vmul.f32 %v2319_v32, %v1582_v37  ;;  %v1461_v45 = vadd.f32 %v2756_v29, %v1427_v38 }
 0x2d7   : > { %v2321_v62 = vpop.eup %2320  ;;  %v1584_v47 = vadd.f32 %v2319_v32, %v1583_v42  ;;  %v2122_v48 = vmul.f32 -1.442695, %v1461_v45 }
 0x2d8   : > { %v2323_v49 = vpop.eup %2322  ;;  %v1524_v51 = vadd.f32 1.0, %v2321_v62 }
 0x2d9   : > { %v1588_v52 = vsel %vm1587_vm15, %v2319_v32, %v1584_v47  ;;  %v1596_v53 = vmul.f32 %v2323_v49, %v1523_v54  ;;  %2324 = vpow2.f32 %v2122_v48  ;;  %vm1601_vm1 = vweird.f32 %v2323_v49 }
 0x2da   : > { %v1593_v55 = vsel %vm1590_vm0, %v1592_v50, %v1588_v52  ;;  %2326 = vrcp.f32 %v1524_v51  ;;  %v1428_v56 = vpop.f32.mrf.mxu3  ;;  %vm1602_vm4 = vmor %vm1600_vm2, %vm1601_vm1  ;;  %v1621_v12 = vand.u32 2147483648, %v1524_v51  ;;  %v1619_v44 = vand.u32 2147483647, %v1524_v51 }
 0x2db   : > { %1779 = vst.msk [vmem:[%s2560_s25 + $0x18] sm:$0xff] %vm1775_vm3, %v1593_v55  ;;  %v1597_v5 = vsub.f32 1.0, %v1596_v53  ;;  %v1429_v57 = vadd.f32 %v1428_v56, %v1331_v21  ;;  %vm1615_vm7 = vweird.f32 %v1524_v51  ;;  %v1339_v21 = vpop.f32.mrf.mxu2 }
 0x2dc   : > { %v1622_v19 = vor.u32 1.1754944e-38, %v1621_v12  ;;  %vm1620_vm9 = vcmp.eq.f32.partialorder %v1619_v44, 8.507059e+37 }
 0x2dd   : > { %v1598_v59 = vmul.f32 %v2323_v49, %v1597_v5  ;;  %v1462_v61 = vadd.f32 %v2756_v29, %v1429_v57 }
 0x2df   : > { %v2325_v0 = vpop.eup %2324  ;;  %v1599_v1 = vadd.f32 %v2323_v49, %v1598_v59  ;;  %v2123_v2 = vmul.f32 -1.442695, %v1462_v61 }
 0x2e0   : > { %v2327_v3 = vpop.eup %2326  ;;  %v1525_v41 = vadd.f32 1.0, %v2325_v0 }
 0x2e1   : > { %v1603_v4 = vsel %vm1602_vm4, %v2323_v49, %v1599_v1  ;;  %v1611_v7 = vmul.f32 %v2327_v3, %v1524_v51  ;;  %2328 = vpow2.f32 %v2123_v2  ;;  %vm1616_vm6 = vweird.f32 %v2327_v3 }
 0x2e2   : > { %v1608_v8 = vsel %vm1605_vm5, %v1607_v13, %v1603_v4  ;;  %2330 = vrcp.f32 %v1525_v41  ;;  %v1431_v9 = vpop.f32.mrf.mxu3  ;;  %vm1617_vm8 = vmor %vm1615_vm7, %vm1616_vm6  ;;  %v1636_v28 = vand.u32 2147483648, %v1525_v41  ;;  %v1634_v31 = vand.u32 2147483647, %v1525_v41 }
 0x2e3   : > { %1780 = vst.msk [vmem:[%s2560_s25 + $0x20] sm:$0xff] %vm1775_vm3, %v1608_v8  ;;  %v1612_v10 = vsub.f32 1.0, %v1611_v7  ;;  %v1432_v11 = vadd.f32 %v1431_v9, %v1334_v40  ;;  %vm1630_vm11 = vweird.f32 %v1525_v41  ;;  %v1341_v40 = vpop.f32.mrf.mxu2 }
 0x2e4   : > { %v1637_v36 = vor.u32 1.1754944e-38, %v1636_v28  ;;  %vm1635_vm13 = vcmp.eq.f32.partialorder %v1634_v31, 8.507059e+37 }
 0x2e5   : > { %v1613_v14 = vmul.f32 %v2327_v3, %v1612_v10  ;;  %v1463_v15 = vadd.f32 %v2756_v29, %v1432_v11 }
 0x2e7   : > { %v2329_v24 = vpop.eup %2328  ;;  %v1614_v16 = vadd.f32 %v2327_v3, %v1613_v14  ;;  %v2124_v17 = vmul.f32 -1.442695, %v1463_v15 }
 0x2e8   : > { %v2331_v18 = vpop.eup %2330  ;;  %v1526_v20 = vadd.f32 1.0, %v2329_v24 }
 0x2e9   : > { %v1618_v22 = vsel %vm1617_vm8, %v2327_v3, %v1614_v16  ;;  %v1626_v46 = vmul.f32 %v2331_v18, %v1525_v41  ;;  %2332 = vpow2.f32 %v2124_v17  ;;  %vm1631_vm10 = vweird.f32 %v2331_v18 }
 0x2ea   : > { %v1623_v23 = vsel %vm1620_vm9, %v1622_v19, %v1618_v22  ;;  %2334 = vrcp.f32 %v1526_v20  ;;  %v1433_v25 = vpop.f32.mrf.mxu3  ;;  %vm1632_vm12 = vmor %vm1630_vm11, %vm1631_vm10  ;;  %v1651_v62 = vand.u32 2147483648, %v1526_v20  ;;  %v1649_v48 = vand.u32 2147483647, %v1526_v20 }
 0x2eb   : > { %1781 = vst.msk [vmem:[%s2560_s25 + $0x28] sm:$0xff] %vm1775_vm3, %v1623_v23  ;;  %v1627_v26 = vsub.f32 1.0, %v1626_v46  ;;  %v1434_v27 = vadd.f32 %v1433_v25, %v1336_v63  ;;  %vm1645_vm15 = vweird.f32 %v1526_v20  ;;  %v1344_v0 = vpop.f32.mrf.mxu2 }
 0x2ec   : > { %v1652_v55 = vor.u32 1.1754944e-38, %v1651_v62  ;;  %vm1650_vm1 = vcmp.eq.f32.partialorder %v1649_v48, 8.507059e+37 }
 0x2ed   : > { %v1628_v30 = vmul.f32 %v2331_v18, %v1627_v26  ;;  %v1464_v32 = vadd.f32 %v2756_v29, %v1434_v27 }
 0x2ef   : > { %v2333_v33 = vpop.eup %2332  ;;  %v1629_v54 = vadd.f32 %v2331_v18, %v1628_v30  ;;  %v2125_v34 = vmul.f32 -1.442695, %v1464_v32 }
 0x2f0   : > { %v2335_v35 = vpop.eup %2334  ;;  %v1527_v6 = vadd.f32 1.0, %v2333_v33 }
 0x2f1   : > { %v1633_v37 = vsel %vm1632_vm12, %v2331_v18, %v1629_v54  ;;  %v1641_v38 = vmul.f32 %v2335_v35, %v1526_v20  ;;  %2336 = vpow2.f32 %v2125_v34  ;;  %vm1646_vm14 = vweird.f32 %v2335_v35 }
 0x2f2   : > { %v1638_v39 = vsel %vm1635_vm13, %v1637_v36, %v1633_v37  ;;  %2338 = vrcp.f32 %v1527_v6  ;;  %v1436_v42 = vpop.f32.mrf.mxu3  ;;  %vm1647_vm0 = vmor %vm1645_vm15, %vm1646_vm14  ;;  %v1666_v63 = vand.u32 2147483648, %v1527_v6  ;;  %v1664_v2 = vand.u32 2147483647, %v1527_v6 }
 0x2f3   : > { %1782 = vst.msk [vmem:[%s2560_s25 + $0x30] sm:$0xff] %vm1775_vm3, %v1638_v39  ;;  %v1642_v43 = vsub.f32 1.0, %v1641_v38  ;;  %v1437_v45 = vadd.f32 %v1436_v42, %v1339_v21  ;;  %vm1660_vm4 = vweird.f32 %v1527_v6  ;;  %v1346_v19 = vpop.f32.mrf.mxu2 }
 0x2f4   : > { %v1667_v8 = vor.u32 1.1754944e-38, %v1666_v63  ;;  %vm1665_vm6 = vcmp.eq.f32.partialorder %v1664_v2, 8.507059e+37 }
 0x2f5   : > { %v1643_v47 = vmul.f32 %v2335_v35, %v1642_v43  ;;  %v1465_v49 = vadd.f32 %v2756_v29, %v1437_v45 }
 0x2f7   : > { %v2337_v50 = vpop.eup %2336  ;;  %v1644_v51 = vadd.f32 %v2335_v35, %v1643_v47  ;;  %v2126_v52 = vmul.f32 -1.442695, %v1465_v49 }
 0x2f8   : > { %v2339_v53 = vpop.eup %2338  ;;  %v1528_v56 = vadd.f32 1.0, %v2337_v50 }
 0x2f9   : > { %v1648_v5 = vsel %vm1647_vm0, %v2335_v35, %v1644_v51  ;;  %v1656_v57 = vmul.f32 %v2339_v53, %v1527_v6  ;;  %2340 = vpow2.f32 %v2126_v52  ;;  %vm1661_vm2 = vweird.f32 %v2339_v53 }
 0x2fa   : > { %v1653_v58 = vsel %vm1650_vm1, %v1652_v55, %v1648_v5  ;;  %2342 = vrcp.f32 %v1528_v56  ;;  %v1438_v59 = vpop.f32.mrf.mxu3  ;;  %vm1662_vm5 = vmor %vm1660_vm4, %vm1661_vm2  ;;  %v1681_v24 = vand.u32 2147483648, %v1528_v56  ;;  %v1679_v17 = vand.u32 2147483647, %v1528_v56 }
 0x2fb   : > { %1783 = vst.msk [vmem:[%s2560_s25 + $0x38] sm:$0xff] %vm1775_vm3, %v1653_v58  ;;  %v1657_v60 = vsub.f32 1.0, %v1656_v57  ;;  %v1439_v61 = vadd.f32 %v1438_v59, %v1341_v40  ;;  %vm1675_vm8 = vweird.f32 %v1528_v56  ;;  %v1349_v42 = vpop.f32.mrf.mxu2 }
 0x2fc   : > { %v1682_v23 = vor.u32 1.1754944e-38, %v1681_v24  ;;  %vm1680_vm10 = vcmp.eq.f32.partialorder %v1679_v17, 8.507059e+37 }
 0x2fd   : > { %v1658_v1 = vmul.f32 %v2339_v53, %v1657_v60  ;;  %v1466_v3 = vadd.f32 %v2756_v29, %v1439_v61 }
 0x2ff   : > { %v2341_v13 = vpop.eup %2340  ;;  %v1659_v41 = vadd.f32 %v2339_v53, %v1658_v1  ;;  %v2127_v4 = vmul.f32 -1.442695, %v1466_v3 }
 0x300   : > { %v2343_v7 = vpop.eup %2342  ;;  %v1529_v9 = vadd.f32 1.0, %v2341_v13 }
 0x301   : > { %v1663_v10 = vsel %vm1662_vm5, %v2339_v53, %v1659_v41  ;;  %v1671_v11 = vmul.f32 %v2343_v7, %v1528_v56  ;;  %2344 = vpow2.f32 %v2127_v4  ;;  %vm1676_vm7 = vweird.f32 %v2343_v7 }
 0x302   : > { %v1668_v12 = vsel %vm1665_vm6, %v1667_v8, %v1663_v10  ;;  %2346 = vrcp.f32 %v1529_v9  ;;  %v1441_v14 = vpop.f32.mrf.mxu3  ;;  %vm1677_vm9 = vmor %vm1675_vm8, %vm1676_vm7  ;;  %v1696_v33 = vand.u32 2147483648, %v1529_v9  ;;  %v1694_v34 = vand.u32 2147483647, %v1529_v9 }
 0x303   : > { %1784 = vst.msk [vmem:[%s2560_s25 + $0x40] sm:$0xff] %vm1775_vm3, %v1668_v12  ;;  %v1672_v44 = vsub.f32 1.0, %v1671_v11  ;;  %v1442_v15 = vadd.f32 %v1441_v14, %v1344_v0  ;;  %vm1690_vm12 = vweird.f32 %v1529_v9  ;;  %v1351_v0 = vpop.f32.mrf.mxu2 }
 0x304   : > { %v1697_v39 = vor.u32 1.1754944e-38, %v1696_v33  ;;  %vm1695_vm14 = vcmp.eq.f32.partialorder %v1694_v34, 8.507059e+37 }
 0x305   : > { %v1673_v16 = vmul.f32 %v2343_v7, %v1672_v44  ;;  %v1467_v18 = vadd.f32 %v2756_v29, %v1442_v15 }
 0x307   : > { %v2345_v20 = vpop.eup %2344  ;;  %v1674_v21 = vadd.f32 %v2343_v7, %v1673_v16  ;;  %v2128_v22 = vmul.f32 -1.442695, %v1467_v18 }
 0x308   : > { %v2347_v46 = vpop.eup %2346  ;;  %v1530_v25 = vadd.f32 1.0, %v2345_v20 }
 0x309   : > { %v1678_v26 = vsel %vm1677_vm9, %v2343_v7, %v1674_v21  ;;  %v1686_v27 = vmul.f32 %v2347_v46, %v1529_v9  ;;  %2348 = vpow2.f32 %v2128_v22  ;;  %vm1691_vm11 = vweird.f32 %v2347_v46 }
 0x30a   : > { %v1683_v28 = vsel %vm1680_vm10, %v1682_v23, %v1678_v26  ;;  %2350 = vrcp.f32 %v1530_v25  ;;  %v1443_v30 = vpop.f32.mrf.mxu3  ;;  %vm1692_vm13 = vmor %vm1690_vm12, %vm1691_vm11  ;;  %v1711_v50 = vand.u32 2147483648, %v1530_v25  ;;  %v1709_v52 = vand.u32 2147483647, %v1530_v25 }
 0x30b   : > { %1785 = vst.msk [vmem:[%s2560_s25 + $0x48] sm:$0xff] %vm1775_vm3, %v1683_v28  ;;  %v1687_v31 = vsub.f32 1.0, %v1686_v27  ;;  %v1444_v32 = vadd.f32 %v1443_v30, %v1346_v19  ;;  %vm1705_vm0 = vweird.f32 %v1530_v25 }
 0x30c   : > { %v1712_v58 = vor.u32 1.1754944e-38, %v1711_v50  ;;  %vm1710_vm2 = vcmp.eq.f32.partialorder %v1709_v52, 8.507059e+37 }
 0x30d   : > { %v1688_v54 = vmul.f32 %v2347_v46, %v1687_v31  ;;  %v1468_v35 = vadd.f32 %v2756_v29, %v1444_v32 }
 0x30f   : > { %v2349_v36 = vpop.eup %2348  ;;  %v1689_v6 = vadd.f32 %v2347_v46, %v1688_v54  ;;  %v2129_v37 = vmul.f32 -1.442695, %v1468_v35 }
 0x310   : > { %v2351_v38 = vpop.eup %2350  ;;  %v1531_v40 = vadd.f32 1.0, %v2349_v36 }
 0x311   : > { %v1693_v43 = vsel %vm1692_vm13, %v2347_v46, %v1689_v6  ;;  %v1701_v45 = vmul.f32 %v2351_v38, %v1530_v25  ;;  %2352 = vpow2.f32 %v2129_v37  ;;  %vm1706_vm15 = vweird.f32 %v2351_v38 }
 0x312   : > { %v1698_v62 = vsel %vm1695_vm14, %v1697_v39, %v1693_v43  ;;  %2354 = vrcp.f32 %v1531_v40  ;;  %v1446_v47 = vpop.f32.mrf.mxu3  ;;  %vm1707_vm1 = vmor %vm1705_vm0, %vm1706_vm15  ;;  %v1726_v13 = vand.u32 2147483648, %v1531_v40  ;;  %v1724_v4 = vand.u32 2147483647, %v1531_v40 }
 0x313   : > { %1786 = vst.msk [vmem:[%s2560_s25 + $0x50] sm:$0xff] %vm1775_vm3, %v1698_v62  ;;  %v1702_v48 = vsub.f32 1.0, %v1701_v45  ;;  %v1447_v49 = vadd.f32 %v1446_v47, %v1349_v42  ;;  %vm1720_vm5 = vweird.f32 %v1531_v40 }
 0x314   : > { %v1727_v12 = vor.u32 1.1754944e-38, %v1726_v13  ;;  %vm1725_vm7 = vcmp.eq.f32.partialorder %v1724_v4, 8.507059e+37 }
 0x315   : > { %v1703_v51 = vmul.f32 %v2351_v38, %v1702_v48  ;;  %v1469_v53 = vadd.f32 %v2756_v29, %v1447_v49 }
 0x317   : > { %v2353_v55 = vpop.eup %2352  ;;  %v1704_v56 = vadd.f32 %v2351_v38, %v1703_v51  ;;  %v2130_v5 = vmul.f32 -1.442695, %v1469_v53 }
 0x318   : > { %v2355_v57 = vpop.eup %2354  ;;  %v1532_v59 = vadd.f32 1.0, %v2353_v55 }
 0x319   : > { %v1708_v60 = vsel %vm1707_vm1, %v2351_v38, %v1704_v56  ;;  %v1716_v61 = vmul.f32 %v2355_v57, %v1531_v40  ;;  %2356 = vpow2.f32 %v2130_v5  ;;  %vm1721_vm4 = vweird.f32 %v2355_v57 }
 0x31a   : > { %v1713_v63 = vsel %vm1710_vm2, %v1712_v58, %v1708_v60  ;;  %2358 = vrcp.f32 %v1532_v59  ;;  %v1448_v1 = vpop.f32.mrf.mxu3  ;;  %vm1722_vm6 = vmor %vm1720_vm5, %vm1721_vm4  ;;  %v1741_v17 = vand.u32 2147483648, %v1532_v59  ;;  %v1739_v18 = vand.u32 2147483647, %v1532_v59 }
 0x31b   : > { %1787 = vst.msk [vmem:[%s2560_s25 + $0x58] sm:$0xff] %vm1775_vm3, %v1713_v63  ;;  %v1717_v2 = vsub.f32 1.0, %v1716_v61  ;;  %v1449_v3 = vadd.f32 %v1448_v1, %v1351_v0  ;;  %vm1735_vm9 = vweird.f32 %v1532_v59 }
 0x31c   : > { %v1742_v22 = vor.u32 1.1754944e-38, %v1741_v17  ;;  %vm1740_vm11 = vcmp.eq.f32.partialorder %v1739_v18, 8.507059e+37 }
 0x31d   : > { %v1718_v41 = vmul.f32 %v2355_v57, %v1717_v2  ;;  %v1470_v7 = vadd.f32 %v2756_v29, %v1449_v3 }
 0x31f   : > { %v2357_v8 = vpop.eup %2356  ;;  %v1719_v9 = vadd.f32 %v2355_v57, %v1718_v41  ;;  %v2131_v10 = vmul.f32 -1.442695, %v1470_v7 }
 0x320   : > { %v2359_v11 = vpop.eup %2358  ;;  %v1533_v14 = vadd.f32 1.0, %v2357_v8 }
 0x321   : > { %v1723_v44 = vsel %vm1722_vm6, %v2355_v57, %v1719_v9  ;;  %v1731_v15 = vmul.f32 %v2359_v11, %v1532_v59  ;;  %2360 = vpow2.f32 %v2131_v10  ;;  %vm1736_vm8 = vweird.f32 %v2359_v11 }
 0x322   : > { %v1728_v24 = vsel %vm1725_vm7, %v1727_v12, %v1723_v44  ;;  %2362 = vrcp.f32 %v1533_v14  ;;  %vm1737_vm10 = vmor %vm1735_vm9, %vm1736_vm8  ;;  %v1756_v28 = vand.u32 2147483648, %v1533_v14  ;;  %v1754_v31 = vand.u32 2147483647, %v1533_v14 }
 0x323   : > { %1788 = vst.msk [vmem:[%s2560_s25 + $0x60] sm:$0xff] %vm1775_vm3, %v1728_v24  ;;  %v1732_v16 = vsub.f32 1.0, %v1731_v15  ;;  %vm1750_vm13 = vweird.f32 %v1533_v14 }
 0x324   : > { %v1757_v54 = vor.u32 1.1754944e-38, %v1756_v28  ;;  %vm1755_vm15 = vcmp.eq.f32.partialorder %v1754_v31, 8.507059e+37 }
 0x325   : > { %v1733_v29 = vmul.f32 %v2359_v11, %v1732_v16 }
 0x327   : > { %v2361_v19 = vpop.eup %2360  ;;  %v1734_v20 = vadd.f32 %v2359_v11, %v1733_v29 }
 0x328   : > { %v2363_v21 = vpop.eup %2362  ;;  %v1534_v46 = vadd.f32 1.0, %v2361_v19 }
 0x329   : > { %v1738_v23 = vsel %vm1737_vm10, %v2359_v11, %v1734_v20  ;;  %v1746_v25 = vmul.f32 %v2363_v21, %v1533_v14  ;;  %vm1751_vm12 = vweird.f32 %v2363_v21 }
 0x32a   : > { %v1743_v26 = vsel %vm1740_vm11, %v1742_v22, %v1738_v23  ;;  %2364 = vrcp.f32 %v1534_v46  ;;  %vm1752_vm14 = vmor %vm1750_vm13, %vm1751_vm12  ;;  %v1771_v37 = vand.u32 2147483648, %v1534_v46  ;;  %v1769_v39 = vand.u32 2147483647, %v1534_v46 }
 0x32b   : > { %1789 = vst.msk [vmem:[%s2560_s25 + $0x68] sm:$0xff] %vm1775_vm3, %v1743_v26  ;;  %v1747_v27 = vsub.f32 1.0, %v1746_v25  ;;  %vm1765_vm1 = vweird.f32 %v1534_v46 }
 0x32c   : > { %v1772_v42 = vor.u32 1.1754944e-38, %v1771_v37  ;;  %vm1770_vm4 = vcmp.eq.f32.partialorder %v1769_v39, 8.507059e+37 }
 0x32d   : > { %v1748_v30 = vmul.f32 %v2363_v21, %v1747_v27 }
 0x32f   : > { %v1749_v32 = vadd.f32 %v2363_v21, %v1748_v30 }
 0x330   : > { %v2365_v33 = vpop.eup %2364 }
 0x331   : > { %v1753_v34 = vsel %vm1752_vm14, %v2363_v21, %v1749_v32  ;;  %v1761_v35 = vmul.f32 %v2365_v33, %v1534_v46  ;;  %vm1766_vm0 = vweird.f32 %v2365_v33 }
 0x332   : > { %v1758_v36 = vsel %vm1755_vm15, %v1757_v54, %v1753_v34  ;;  %vm1767_vm2 = vmor %vm1765_vm1, %vm1766_vm0 }
 0x333   : > { %1790 = vst.msk [vmem:[%s2560_s25 + $0x70] sm:$0xff] %vm1775_vm3, %v1758_v36  ;;  %v1762_v6 = vsub.f32 1.0, %v1761_v35 }
 0x335   : > { %v1763_v38 = vmul.f32 %v2365_v33, %v1762_v6 }
 0x337   : > { %v1764_v40 = vadd.f32 %v2365_v33, %v1763_v38 }
 0x339   : > { %v1768_v43 = vsel %vm1767_vm2, %v2365_v33, %v1764_v40 }
 0x33a   : > { %v1773_v45 = vsel %vm1770_vm4, %v1772_v42, %v1768_v43 }
 0x33b   : > { %1791 = vst.msk [vmem:[%s2560_s25 + $0x78] sm:$0xff] %vm1775_vm3, %v1773_v45 }
 0x33c PF: > { %s22_s21 = sadd.s32 1, %s2420_s21   ;;  %s2846_s18 = sld [smem:[#allocation5_spill]] }
 0x33d   : > { %p19_p0 = scmp.ge.s32.totalorder %s22_s21, 11   ;;  %s2847_s20 = sld [smem:[#allocation6_spill]] }
 0x33e   : > { %s2848_s9 = sld [smem:[#allocation7_spill]]  ;;  %s2849_s15 = smov %s2400_s16 }
 0x33f   : > { %s2850_s16 = smov %s2533_s27  ;;  %s2851_s17 = smov %s2412_s19 }
 0x340   :  { %21 = sbr.rel (!%p19_p0) target bundleno = 7 (0x7), region = 150 }
 0x343   : > { %s2852_s19 = smov %s2847_s20 }
 0x344   : > { %s2853_s20 = smov %s2848_s9 }

</bundles_post_ra>
